<compile_context>
chip_gen: v7x
topology: tpu7x:2x2x1
jax: 0.10.0
libtpu: 0.0.40
codegen_flags: <defaults>
</compile_context>

<pallas_src>
import functools

import jax
import jax.numpy as jnp
import numpy as np
from jax.experimental import pallas as pl
from jax.experimental.pallas import tpu as pltpu


# ---------------------------------------------------------------------------
# Fused kernel: projections + attention + head-average + fc + residual + LN
# ---------------------------------------------------------------------------
def _mha_kernel(q_ref, k_ref, v_ref, bias_ref,
                wq_ref, bq_ref, wk_ref, bk_ref, wv_ref, bv_ref,
                wfc_ref, bfc_ref, g_ref, beta_ref,
                out_ref, attn_ref, concat_ref, *,
                n_head, d_k, d_v, eps, skip_connection, average_attn,
                use_bf16):
    f32 = jnp.float32
    b_blk, nq, dm = q_ref.shape
    nk_pad = k_ref.shape[1]

    def mm2(a, b):                       # (M,K) @ (K,N) -> f32
        if use_bf16:
            a = a.astype(jnp.bfloat16)
            b = b.astype(jnp.bfloat16)
        return jax.lax.dot_general(a, b, (((1,), (0,)), ((), ())),
                                   preferred_element_type=f32)

    def bmm(a, b, rhs_contract):         # batched over dim 0, contract a's last dim
        if use_bf16:
            a = a.astype(jnp.bfloat16)
            b = b.astype(jnp.bfloat16)
        return jax.lax.dot_general(a, b,
                                   (((2,), (rhs_contract,)), ((0,), (0,))),
                                   preferred_element_type=f32)

    # Flatten the batch block into the MXU M dimension for projections / fc / LN.
    q2 = q_ref[...].reshape(b_blk * nq, dm)
    k2 = k_ref[...].reshape(b_blk * nk_pad, dm)
    v2 = v_ref[...].reshape(b_blk * nk_pad, dm)

    # Head-fused projections (MXU N = n_head*d_k / n_head*d_v).
    # 1/temperature has been folded into wq/bq by the wrapper.
    qh_all = (mm2(q2, wq_ref[...]) + bq_ref[...]).reshape(b_blk, nq, n_head * d_k)
    kh_all = (mm2(k2, wk_ref[...]) + bk_ref[...]).reshape(b_blk, nk_pad, n_head * d_k)
    vh_all = (mm2(v2, wv_ref[...]) + bv_ref[...]).reshape(b_blk, nk_pad, n_head * d_v)

    bias = bias_ref[...]                 # (b_blk, 1, nk_pad): 0.0 or -1e30

    for h in range(n_head):
        qh = qh_all[:, :, h * d_k:(h + 1) * d_k]
        kh = kh_all[:, :, h * d_k:(h + 1) * d_k]
        vh = vh_all[:, :, h * d_v:(h + 1) * d_v]

        # q @ k^T (contract last dims, no transpose materialized) + mask bias.
        s = bmm(qh, kh, 2) + bias                        # (b_blk, nq, nk_pad)
        m = jnp.max(s, axis=-1, keepdims=True)
        p = jnp.exp(s - m)
        denom = jnp.sum(p, axis=-1, keepdims=True)
        attn_h = p * pl.reciprocal(denom, approx=True)   # softmax(dim=-1)
        # attn_dropout: identity (eval mode)

        if average_attn:
            # Accumulate directly into the VMEM-resident output block.
            if h == 0:
                attn_ref[...] = attn_h
            else:
                attn_ref[...] += attn_h
        else:
            attn_ref[:, h, :, :] = attn_h

        # Write this head's output into its column slice of the VMEM scratch
        # (replaces jnp.concatenate; keeps only one head's output live).
        concat_ref[:, :, h * d_v:(h + 1) * d_v] = bmm(attn_h, vh, 1)

    if average_attn:
        attn_ref[...] *= (1.0 / n_head)

    # fc + residual + LayerNorm on the flattened (b_blk*nq, .) slab.
    concat2 = concat_ref[...].reshape(b_blk * nq, n_head * d_v)
    y = mm2(concat2, wfc_ref[...]) + bfc_ref[...]
    # output dropout: identity (eval mode)
    if skip_connection:
        y = y + q2.astype(f32)
    mean = jnp.mean(y, axis=-1, keepdims=True)
    var = jnp.mean(jnp.square(y - mean), axis=-1, keepdims=True)
    yn = (y - mean) * jax.lax.rsqrt(var + eps)
    out = yn * g_ref[...] + beta_ref[...]
    out_ref[...] = out.reshape(b_blk, nq, out_ref.shape[-1])


# ---------------------------------------------------------------------------
# Wrapper
# ---------------------------------------------------------------------------
def mha_bougui_forward(q, k, v, params, key_padding_mask=None,
                       average_attn_weights=True, temperature=None,
                       skip_connection=True, use_bf16=False, batch_block=None):
    """q:(bs,nq,dm)  k,v:(bs,nk,dm).
    Returns (out:(bs,nq,d_out), attn:(bs,nq,nk) or (bs,n_head,nq,nk))."""
    bs, nq, dm = q.shape
    _, nk, _ = k.shape
    n_head, d_k, d_v = params["n_head"], params["d_k"], params["d_v"]
    d_out = params["wfc"].shape[-1]
    if temperature is None:
        temperature = float(np.sqrt(d_k))
    skip = bool(skip_connection) and (d_out == dm)     # matches torch module

    # Pad the key axis to a lane-dense multiple of 128; padded keys are masked.
    nk_pad = max(128, ((nk + 127) // 128) * 128)
    pad = nk_pad - nk
    if key_padding_mask is None:
        kpm = jnp.zeros((bs, nk), dtype=jnp.int32)
    else:
        kpm = key_padding_mask.astype(jnp.int32)
    if pad:
        k = jnp.pad(k, ((0, 0), (0, pad), (0, 0)))
        v = jnp.pad(v, ((0, 0), (0, pad), (0, 0)))
        kpm = jnp.pad(kpm, ((0, 0), (0, pad)), constant_values=1)
    # Additive mask bias computed once outside the kernel (no per-head select).
    bias = jnp.where(kpm != 0, jnp.float32(-1e30),
                     jnp.float32(0.0)).reshape(bs, 1, nk_pad)

    # Fold 1/temperature into the Q projection; optionally pre-cast weights.
    inv_t = jnp.float32(1.0 / float(temperature))
    wdt = jnp.bfloat16 if use_bf16 else jnp.float32
    wq = (params["wq"] * inv_t).astype(wdt)
    bq = (params["bq"] * inv_t).reshape(1, -1)
    wk = params["wk"].astype(wdt)
    wv = params["wv"].astype(wdt)
    wfc = params["wfc"].astype(wdt)

    # Batch-stack several batch elements per grid step (raises MXU M, cuts
    # per-step overhead).  b_blk must divide bs.
    n_attn = 1 if average_attn_weights else n_head
    if batch_block is None:
        b_blk = 1
        for cand in range(1, bs + 1):
            if bs % cand:
                continue
            act_b = cand * 4 * (nq * dm + 2 * nk_pad * dm + nq * nk_pad * n_attn
                                + nq * d_out + nq * n_head * d_v)
            if cand * nq <= 256 and act_b <= 8 * 2**20:
                b_blk = cand
    else:
        b_blk = int(batch_block)
    assert bs % b_blk == 0, "batch_block must divide the batch size"
    grid = (bs // b_blk,)

    f32 = jnp.float32
    if average_attn_weights:
        attn_shape = jax.ShapeDtypeStruct((bs, nq, nk_pad), f32)
        attn_spec = pl.BlockSpec((b_blk, nq, nk_pad), lambda i: (i, 0, 0))
    else:
        attn_shape = jax.ShapeDtypeStruct((bs, n_head, nq, nk_pad), f32)
        attn_spec = pl.BlockSpec((b_blk, n_head, nq, nk_pad),
                                 lambda i: (i, 0, 0, 0))

    # Explicit scoped-VMEM budget: double-buffered activation blocks +
    # single-copy weights + scratch, with headroom.  Capped at 64 MiB so the
    # limit is valid on v5e/v6e/v7x alike.
    wbytes = (wq.size + wk.size + wv.size + wfc.size) * (2 if use_bf16 else 4)
    wbytes += (2 * n_head * d_k + n_head * d_v + 3 * d_out) * 4
    act_bytes = b_blk * 4 * (nq * dm + 2 * nk_pad * dm + nk_pad
                             + nq * d_out + nq * nk_pad * n_attn)
    scratch_bytes = b_blk * nq * n_head * d_v * 4
    needed = 2 * act_bytes + wbytes + scratch_bytes
    vmem_limit = int(min(max(needed * 1.5, 32 * 2**20), 64 * 2**20))

    kernel = functools.partial(
        _mha_kernel, n_head=n_head, d_k=d_k, d_v=d_v, eps=1e-5,
        skip_connection=skip, average_attn=bool(average_attn_weights),
        use_bf16=bool(use_bf16))

    # Weights / biases / LN params: whole-array VMEM residents (single copy,
    # no per-step double buffering).
    wspec = pl.BlockSpec(memory_space=pltpu.MemorySpace.VMEM)

    out, attn = pl.pallas_call(
        kernel,
        out_shape=[jax.ShapeDtypeStruct((bs, nq, d_out), f32), attn_shape],
        grid=grid,
        in_specs=[
            pl.BlockSpec((b_blk, nq, dm), lambda i: (i, 0, 0)),        # q
            pl.BlockSpec((b_blk, nk_pad, dm), lambda i: (i, 0, 0)),    # k
            pl.BlockSpec((b_blk, nk_pad, dm), lambda i: (i, 0, 0)),    # v
            pl.BlockSpec((b_blk, 1, nk_pad), lambda i: (i, 0, 0)),     # mask bias
            wspec, wspec, wspec, wspec, wspec,                         # wq bq wk bk wv
            wspec, wspec, wspec, wspec, wspec,                         # bv wfc bfc g beta
        ],
        out_specs=[
            pl.BlockSpec((b_blk, nq, d_out), lambda i: (i, 0, 0)),
            attn_spec,
        ],
        scratch_shapes=[pltpu.VMEM((b_blk, nq, n_head * d_v), jnp.float32)],
        compiler_params=pltpu.CompilerParams(
            dimension_semantics=("parallel",),
            vmem_limit_bytes=vmem_limit),
    )(q, k, v, bias,
      wq, bq, wk, params["bk"].reshape(1, -1),
      wv, params["bv"].reshape(1, -1),
      wfc, params["bfc"].reshape(1, -1),
      params["ln_g"].reshape(1, -1), params["ln_b"].reshape(1, -1))

    # TODO(synk): on v5e with very large nk, returning nk_pad columns (or a
    # bf16 attention map) avoids this extra full HBM pass.
    attn = attn[..., :nk]
    return out, attn


# ---------------------------------------------------------------------------
# Deterministic parameter init (mirrors the PyTorch __init__ shapes/inits).
# Weights are stored head-fused and pre-transposed: x @ W + b.
# ---------------------------------------------------------------------------
def init_params(key, n_head, d_model, d_k=None, d_v=None, d_out=None):
    if d_k is None:
        d_k = d_model
    if d_v is None:
        d_v = d_model
    if d_out is None:
        d_out = d_model
    ks = jax.random.split(key, 8)
    std_qk = np.sqrt(2.0 / (d_model + d_k))
    std_v = np.sqrt(2.0 / (d_model + d_v))
    std_fc = np.sqrt(2.0 / (n_head * d_v + d_out))        # xavier_normal_

    def norm(kk, shape, std):
        return std * jax.random.normal(kk, shape, dtype=jnp.float32)

    def unif(kk, shape, bound):
        return jax.random.uniform(kk, shape, dtype=jnp.float32,
                                  minval=-bound, maxval=bound)

    return dict(
        n_head=n_head, d_k=d_k, d_v=d_v,
        wq=norm(ks[0], (d_model, n_head * d_k), std_qk),
        bq=unif(ks[1], (n_head * d_k,), 1.0 / np.sqrt(d_model)),
        wk=norm(ks[2], (d_model, n_head * d_k), std_qk),
        bk=unif(ks[3], (n_head * d_k,), 1.0 / np.sqrt(d_model)),
        wv=norm(ks[4], (d_model, n_head * d_v), std_v),
        bv=unif(ks[5], (n_head * d_v,), 1.0 / np.sqrt(d_model)),
        wfc=norm(ks[6], (n_head * d_v, d_out), std_fc),
        bfc=unif(ks[7], (d_out,), 1.0 / np.sqrt(n_head * d_v)),
        ln_g=jnp.ones((d_out,), jnp.float32),
        ln_b=jnp.zeros((d_out,), jnp.float32),
    )


# ---------------------------------------------------------------------------
# Pure-JAX reference (same math) for a sanity check
# ---------------------------------------------------------------------------
def _reference(q, k, v, p, key_padding_mask, skip_connection=True):
    bs, nq, dm = q.shape
    _, nk, _ = k.shape
    n_head, d_k, d_v = p["n_head"], p["d_k"], p["d_v"]
    d_out = p["wfc"].shape[-1]
    qh = (q @ p["wq"] + p["bq"]).reshape(bs, nq, n_head, d_k)
    kh = (k @ p["wk"] + p["bk"]).reshape(bs, nk, n_head, d_k)
    vh = (v @ p["wv"] + p["bv"]).reshape(bs, nk, n_head, d_v)
    s = jnp.einsum("bqhe,bkhe->bhqk", qh, kh) / np.sqrt(d_k)
    if key_padding_mask is not None:
        s = jnp.where(key_padding_mask[:, None, None, :] != 0, -jnp.inf, s)
    attn = jax.nn.softmax(s, axis=-1)
    oh = jnp.einsum("bhqk,bkhe->bqhe", attn, vh)
    concat = oh.reshape(bs, nq, n_head * d_v)
    y = concat @ p["wfc"] + p["bfc"]
    if skip_connection and d_out == dm:
        y = y + q
    mu = y.mean(-1, keepdims=True)
    var = ((y - mu) ** 2).mean(-1, keepdims=True)
    out = (y - mu) / jnp.sqrt(var + 1e-5) * p["ln_g"] + p["ln_b"]
    return out, attn.mean(axis=1)


if __name__ == "__main__":
    bs, nq, nk = 2, 8, 6
    d_model, n_head, d_k, d_v = 32, 4, 16, 16
    d_out = d_model

    key = jax.random.PRNGKey(0)
    kq, kk, kv, kp = jax.random.split(key, 4)
    q = jax.random.uniform(kq, (bs, nq, d_model), dtype=jnp.float32)
    v = jax.random.uniform(kv, (bs, nk, d_model), dtype=jnp.float32)
    k = v  # as in the docstring example, k = clone(v)

    key_padding_mask = jnp.zeros((bs, nk), dtype=jnp.int32)
    key_padding_mask = key_padding_mask.at[bs - 1, nk - 1].set(1)

    params = init_params(kp, n_head, d_model, d_k, d_v, d_out)

    out, attn = mha_bougui_forward(q, k, v, params,
                                   key_padding_mask=key_padding_mask)
    out = jax.block_until_ready(out)
    attn = jax.block_until_ready(attn)

    ref_out, ref_attn = _reference(q, k, v, params, key_padding_mask)

    assert out.shape == (bs, nq, d_out)
    assert attn.shape == (bs, nq, nk)
    # approx reciprocal (EUP) in the softmax -> slightly looser tolerance
    np.testing.assert_allclose(np.asarray(out), np.asarray(ref_out),
                               rtol=5e-3, atol=5e-3)
    np.testing.assert_allclose(np.asarray(attn), np.asarray(ref_attn),
                               rtol=5e-3, atol=5e-3)
    # masked key column must be exactly zero attention
    assert float(jnp.max(jnp.abs(attn[bs - 1, :, nk - 1]))) == 0.0

    print("KERNEL_OK")
</pallas_src>

<mosaic_0001>
module attributes {stable_mosaic.version = 11 : i64} {
  func.func @_mha_kernel(%arg0: i32, %arg1: memref<2x8x32xf32, #tpu.memory_space<vmem>>, %arg2: memref<2x128x32xf32, #tpu.memory_space<vmem>>, %arg3: memref<2x128x32xf32, #tpu.memory_space<vmem>>, %arg4: memref<2x1x128xf32, #tpu.memory_space<vmem>>, %arg5: memref<32x64xf32, #tpu.memory_space<vmem>>, %arg6: memref<1x64xf32, #tpu.memory_space<vmem>>, %arg7: memref<32x64xf32, #tpu.memory_space<vmem>>, %arg8: memref<1x64xf32, #tpu.memory_space<vmem>>, %arg9: memref<32x64xf32, #tpu.memory_space<vmem>>, %arg10: memref<1x64xf32, #tpu.memory_space<vmem>>, %arg11: memref<64x32xf32, #tpu.memory_space<vmem>>, %arg12: memref<1x32xf32, #tpu.memory_space<vmem>>, %arg13: memref<1x32xf32, #tpu.memory_space<vmem>>, %arg14: memref<1x32xf32, #tpu.memory_space<vmem>>, %arg15: memref<2x8x32xf32, #tpu.memory_space<vmem>>, %arg16: memref<2x8x128xf32, #tpu.memory_space<vmem>>, %arg17: memref<2x8x64xf32, #tpu.memory_space<vmem>>) attributes {dimension_semantics = [#tpu.dimension_semantics<parallel>], iteration_bounds = array<i64: 1>, scalar_prefetch = 0 : i64, scratch_operands = 1 : i64, tpu.core_type = #tpu.core_type<tc>, window_params = [{transform_indices = @transform_0, window_bounds = array<i64: 2, 8, 32>}, {transform_indices = @transform_1, window_bounds = array<i64: 2, 128, 32>}, {transform_indices = @transform_2, window_bounds = array<i64: 2, 128, 32>}, {transform_indices = @transform_3, window_bounds = array<i64: 2, 1, 128>}, {pipeline_mode = #tpu.pipeline_mode<synchronous>, transform_indices = @transform_4, window_bounds = array<i64: 32, 64>}, {pipeline_mode = #tpu.pipeline_mode<synchronous>, transform_indices = @transform_5, window_bounds = array<i64: 1, 64>}, {pipeline_mode = #tpu.pipeline_mode<synchronous>, transform_indices = @transform_6, window_bounds = array<i64: 32, 64>}, {pipeline_mode = #tpu.pipeline_mode<synchronous>, transform_indices = @transform_7, window_bounds = array<i64: 1, 64>}, {pipeline_mode = #tpu.pipeline_mode<synchronous>, transform_indices = @transform_8, window_bounds = array<i64: 32, 64>}, {pipeline_mode = #tpu.pipeline_mode<synchronous>, transform_indices = @transform_9, window_bounds = array<i64: 1, 64>}, {pipeline_mode = #tpu.pipeline_mode<synchronous>, transform_indices = @transform_10, window_bounds = array<i64: 64, 32>}, {pipeline_mode = #tpu.pipeline_mode<synchronous>, transform_indices = @transform_11, window_bounds = array<i64: 1, 32>}, {pipeline_mode = #tpu.pipeline_mode<synchronous>, transform_indices = @transform_12, window_bounds = array<i64: 1, 32>}, {pipeline_mode = #tpu.pipeline_mode<synchronous>, transform_indices = @transform_13, window_bounds = array<i64: 1, 32>}, {transform_indices = @transform_14, window_bounds = array<i64: 2, 8, 32>}, {transform_indices = @transform_15, window_bounds = array<i64: 2, 8, 128>}]} {
    %c0 = arith.constant 0 : index
    %c0_0 = arith.constant 0 : index
    %c0_1 = arith.constant 0 : index
    %0 = vector.load %arg1[%c0, %c0_0, %c0_1] : memref<2x8x32xf32, #tpu.memory_space<vmem>>, vector<2x8x32xf32>
    %1 = vector.shape_cast %0 : vector<2x8x32xf32> to vector<16x32xf32>
    %c0_2 = arith.constant 0 : index
    %c0_3 = arith.constant 0 : index
    %c0_4 = arith.constant 0 : index
    %2 = vector.load %arg2[%c0_2, %c0_3, %c0_4] : memref<2x128x32xf32, #tpu.memory_space<vmem>>, vector<2x128x32xf32>
    %3 = vector.shape_cast %2 : vector<2x128x32xf32> to vector<256x32xf32>
    %c0_5 = arith.constant 0 : index
    %c0_6 = arith.constant 0 : index
    %c0_7 = arith.constant 0 : index
    %4 = vector.load %arg3[%c0_5, %c0_6, %c0_7] : memref<2x128x32xf32, #tpu.memory_space<vmem>>, vector<2x128x32xf32>
    %5 = vector.shape_cast %4 : vector<2x128x32xf32> to vector<256x32xf32>
    %c0_8 = arith.constant 0 : index
    %c0_9 = arith.constant 0 : index
    %6 = vector.load %arg5[%c0_8, %c0_9] : memref<32x64xf32, #tpu.memory_space<vmem>>, vector<32x64xf32>
    %cst = arith.constant dense<0.000000e+00> : vector<16x64xf32>
    %7 = tpu.matmul %1, %6, %cst {dimension_numbers = #tpu.dot_dimension_numbers<[1], [0], [0], [1], [0, 0, 1, 1], [], []>} : vector<16x32xf32>, vector<32x64xf32>, vector<16x64xf32> -> vector<16x64xf32>
    %c0_10 = arith.constant 0 : index
    %c0_11 = arith.constant 0 : index
    %8 = vector.load %arg6[%c0_10, %c0_11] : memref<1x64xf32, #tpu.memory_space<vmem>>, vector<1x64xf32>
    %9 = vector.broadcast %8 : vector<1x64xf32> to vector<16x64xf32>
    %10 = arith.addf %7, %9 : vector<16x64xf32>
    %11 = vector.shape_cast %10 : vector<16x64xf32> to vector<2x8x64xf32>
    %c0_12 = arith.constant 0 : index
    %c0_13 = arith.constant 0 : index
    %12 = vector.load %arg7[%c0_12, %c0_13] : memref<32x64xf32, #tpu.memory_space<vmem>>, vector<32x64xf32>
    %cst_14 = arith.constant dense<0.000000e+00> : vector<256x64xf32>
    %13 = tpu.matmul %3, %12, %cst_14 {dimension_numbers = #tpu.dot_dimension_numbers<[1], [0], [0], [1], [0, 0, 1, 1], [], []>} : vector<256x32xf32>, vector<32x64xf32>, vector<256x64xf32> -> vector<256x64xf32>
    %c0_15 = arith.constant 0 : index
    %c0_16 = arith.constant 0 : index
    %14 = vector.load %arg8[%c0_15, %c0_16] : memref<1x64xf32, #tpu.memory_space<vmem>>, vector<1x64xf32>
    %15 = vector.broadcast %14 : vector<1x64xf32> to vector<256x64xf32>
    %16 = arith.addf %13, %15 : vector<256x64xf32>
    %17 = vector.shape_cast %16 : vector<256x64xf32> to vector<2x128x64xf32>
    %c0_17 = arith.constant 0 : index
    %c0_18 = arith.constant 0 : index
    %18 = vector.load %arg9[%c0_17, %c0_18] : memref<32x64xf32, #tpu.memory_space<vmem>>, vector<32x64xf32>
    %cst_19 = arith.constant dense<0.000000e+00> : vector<256x64xf32>
    %19 = tpu.matmul %5, %18, %cst_19 {dimension_numbers = #tpu.dot_dimension_numbers<[1], [0], [0], [1], [0, 0, 1, 1], [], []>} : vector<256x32xf32>, vector<32x64xf32>, vector<256x64xf32> -> vector<256x64xf32>
    %c0_20 = arith.constant 0 : index
    %c0_21 = arith.constant 0 : index
    %20 = vector.load %arg10[%c0_20, %c0_21] : memref<1x64xf32, #tpu.memory_space<vmem>>, vector<1x64xf32>
    %21 = vector.broadcast %20 : vector<1x64xf32> to vector<256x64xf32>
    %22 = arith.addf %19, %21 : vector<256x64xf32>
    %23 = vector.shape_cast %22 : vector<256x64xf32> to vector<2x128x64xf32>
    %c0_22 = arith.constant 0 : index
    %c0_23 = arith.constant 0 : index
    %c0_24 = arith.constant 0 : index
    %24 = vector.load %arg4[%c0_22, %c0_23, %c0_24] : memref<2x1x128xf32, #tpu.memory_space<vmem>>, vector<2x1x128xf32>
    %25 = vector.extract_strided_slice %11 {offsets = [0, 0, 0], sizes = [2, 8, 16], strides = [1, 1, 1]} : vector<2x8x64xf32> to vector<2x8x16xf32>
    %26 = vector.extract_strided_slice %17 {offsets = [0, 0, 0], sizes = [2, 128, 16], strides = [1, 1, 1]} : vector<2x128x64xf32> to vector<2x128x16xf32>
    %27 = vector.extract_strided_slice %23 {offsets = [0, 0, 0], sizes = [2, 128, 16], strides = [1, 1, 1]} : vector<2x128x64xf32> to vector<2x128x16xf32>
    %cst_25 = arith.constant dense<0.000000e+00> : vector<2x8x128xf32>
    %28 = tpu.matmul %25, %26, %cst_25 {dimension_numbers = #tpu.dot_dimension_numbers<[2], [2], [1], [1], [0, 0, 0, 1, 1, 1], [0], [0]>} : vector<2x8x16xf32>, vector<2x128x16xf32>, vector<2x8x128xf32> -> vector<2x8x128xf32>
    %29 = vector.broadcast %24 : vector<2x1x128xf32> to vector<2x8x128xf32>
    %30 = arith.addf %28, %29 : vector<2x8x128xf32>
    %cst_26 = arith.constant dense<0xFF800000> : vector<2x8xf32>
    %31 = vector.multi_reduction <maximumf>, %30, %cst_26 [2] : vector<2x8x128xf32> to vector<2x8xf32>
    %32 = vector.shape_cast %31 : vector<2x8xf32> to vector<2x8x1xf32>
    %33 = vector.broadcast %32 : vector<2x8x1xf32> to vector<2x8x128xf32>
    %34 = arith.subf %30, %33 : vector<2x8x128xf32>
    %35 = math.exp %34 : vector<2x8x128xf32>
    %cst_27 = arith.constant dense<0.000000e+00> : vector<2x8xf32>
    %36 = vector.multi_reduction <add>, %35, %cst_27 [2] : vector<2x8x128xf32> to vector<2x8xf32>
    %37 = vector.shape_cast %36 : vector<2x8xf32> to vector<2x8x1xf32>
    %38 = tpu.reciprocal %37 {approx = true} : vector<2x8x1xf32> -> vector<2x8x1xf32>
    %39 = vector.broadcast %38 : vector<2x8x1xf32> to vector<2x8x128xf32>
    %40 = arith.mulf %35, %39 : vector<2x8x128xf32>
    %c0_28 = arith.constant 0 : index
    %c0_29 = arith.constant 0 : index
    %c0_30 = arith.constant 0 : index
    %41 = vector.load %arg16[%c0_28, %c0_29, %c0_30] : memref<2x8x128xf32, #tpu.memory_space<vmem>>, vector<2x8x128xf32>
    tpu.vector_store %arg16[%c0_28, %c0_29, %c0_30], %40 {strides = array<i32>} : memref<2x8x128xf32, #tpu.memory_space<vmem>>, vector<2x8x128xf32>,
    %cst_31 = arith.constant dense<0.000000e+00> : vector<2x8x16xf32>
    %42 = tpu.matmul %40, %27, %cst_31 {dimension_numbers = #tpu.dot_dimension_numbers<[2], [1], [1], [2], [0, 0, 0, 1, 1, 2], [0], [0]>} : vector<2x8x128xf32>, vector<2x128x16xf32>, vector<2x8x16xf32> -> vector<2x8x16xf32>
    %c0_32 = arith.constant 0 : index
    %c0_33 = arith.constant 0 : index
    %c0_34 = arith.constant 0 : index
    %43 = vector.load %arg17[%c0_32, %c0_33, %c0_34] : memref<2x8x64xf32, #tpu.memory_space<vmem>>, vector<2x8x16xf32>
    tpu.vector_store %arg17[%c0_32, %c0_33, %c0_34], %42 {strides = array<i32>} : memref<2x8x64xf32, #tpu.memory_space<vmem>>, vector<2x8x16xf32>,
    %44 = vector.extract_strided_slice %11 {offsets = [0, 0, 16], sizes = [2, 8, 16], strides = [1, 1, 1]} : vector<2x8x64xf32> to vector<2x8x16xf32>
    %45 = vector.extract_strided_slice %17 {offsets = [0, 0, 16], sizes = [2, 128, 16], strides = [1, 1, 1]} : vector<2x128x64xf32> to vector<2x128x16xf32>
    %46 = vector.extract_strided_slice %23 {offsets = [0, 0, 16], sizes = [2, 128, 16], strides = [1, 1, 1]} : vector<2x128x64xf32> to vector<2x128x16xf32>
    %cst_35 = arith.constant dense<0.000000e+00> : vector<2x8x128xf32>
    %47 = tpu.matmul %44, %45, %cst_35 {dimension_numbers = #tpu.dot_dimension_numbers<[2], [2], [1], [1], [0, 0, 0, 1, 1, 1], [0], [0]>} : vector<2x8x16xf32>, vector<2x128x16xf32>, vector<2x8x128xf32> -> vector<2x8x128xf32>
    %48 = vector.broadcast %24 : vector<2x1x128xf32> to vector<2x8x128xf32>
    %49 = arith.addf %47, %48 : vector<2x8x128xf32>
    %cst_36 = arith.constant dense<0xFF800000> : vector<2x8xf32>
    %50 = vector.multi_reduction <maximumf>, %49, %cst_36 [2] : vector<2x8x128xf32> to vector<2x8xf32>
    %51 = vector.shape_cast %50 : vector<2x8xf32> to vector<2x8x1xf32>
    %52 = vector.broadcast %51 : vector<2x8x1xf32> to vector<2x8x128xf32>
    %53 = arith.subf %49, %52 : vector<2x8x128xf32>
    %54 = math.exp %53 : vector<2x8x128xf32>
    %cst_37 = arith.constant dense<0.000000e+00> : vector<2x8xf32>
    %55 = vector.multi_reduction <add>, %54, %cst_37 [2] : vector<2x8x128xf32> to vector<2x8xf32>
    %56 = vector.shape_cast %55 : vector<2x8xf32> to vector<2x8x1xf32>
    %57 = tpu.reciprocal %56 {approx = true} : vector<2x8x1xf32> -> vector<2x8x1xf32>
    %58 = vector.broadcast %57 : vector<2x8x1xf32> to vector<2x8x128xf32>
    %59 = arith.mulf %54, %58 : vector<2x8x128xf32>
    %c0_38 = arith.constant 0 : index
    %c0_39 = arith.constant 0 : index
    %c0_40 = arith.constant 0 : index
    %60 = vector.load %arg16[%c0_38, %c0_39, %c0_40] : memref<2x8x128xf32, #tpu.memory_space<vmem>>, vector<2x8x128xf32>
    %61 = arith.addf %60, %59 : vector<2x8x128xf32>
    %c0_41 = arith.constant 0 : index
    %c0_42 = arith.constant 0 : index
    %c0_43 = arith.constant 0 : index
    %62 = vector.load %arg16[%c0_41, %c0_42, %c0_43] : memref<2x8x128xf32, #tpu.memory_space<vmem>>, vector<2x8x128xf32>
    tpu.vector_store %arg16[%c0_41, %c0_42, %c0_43], %61 {strides = array<i32>} : memref<2x8x128xf32, #tpu.memory_space<vmem>>, vector<2x8x128xf32>,
    %cst_44 = arith.constant dense<0.000000e+00> : vector<2x8x16xf32>
    %63 = tpu.matmul %59, %46, %cst_44 {dimension_numbers = #tpu.dot_dimension_numbers<[2], [1], [1], [2], [0, 0, 0, 1, 1, 2], [0], [0]>} : vector<2x8x128xf32>, vector<2x128x16xf32>, vector<2x8x16xf32> -> vector<2x8x16xf32>
    %c0_45 = arith.constant 0 : index
    %c0_46 = arith.constant 0 : index
    %c16 = arith.constant 16 : index
    %64 = vector.load %arg17[%c0_45, %c0_46, %c16] : memref<2x8x64xf32, #tpu.memory_space<vmem>>, vector<2x8x16xf32>
    tpu.vector_store %arg17[%c0_45, %c0_46, %c16], %63 {strides = array<i32>} : memref<2x8x64xf32, #tpu.memory_space<vmem>>, vector<2x8x16xf32>,
    %65 = vector.extract_strided_slice %11 {offsets = [0, 0, 32], sizes = [2, 8, 16], strides = [1, 1, 1]} : vector<2x8x64xf32> to vector<2x8x16xf32>
    %66 = vector.extract_strided_slice %17 {offsets = [0, 0, 32], sizes = [2, 128, 16], strides = [1, 1, 1]} : vector<2x128x64xf32> to vector<2x128x16xf32>
    %67 = vector.extract_strided_slice %23 {offsets = [0, 0, 32], sizes = [2, 128, 16], strides = [1, 1, 1]} : vector<2x128x64xf32> to vector<2x128x16xf32>
    %cst_47 = arith.constant dense<0.000000e+00> : vector<2x8x128xf32>
    %68 = tpu.matmul %65, %66, %cst_47 {dimension_numbers = #tpu.dot_dimension_numbers<[2], [2], [1], [1], [0, 0, 0, 1, 1, 1], [0], [0]>} : vector<2x8x16xf32>, vector<2x128x16xf32>, vector<2x8x128xf32> -> vector<2x8x128xf32>
    %69 = vector.broadcast %24 : vector<2x1x128xf32> to vector<2x8x128xf32>
    %70 = arith.addf %68, %69 : vector<2x8x128xf32>
    %cst_48 = arith.constant dense<0xFF800000> : vector<2x8xf32>
    %71 = vector.multi_reduction <maximumf>, %70, %cst_48 [2] : vector<2x8x128xf32> to vector<2x8xf32>
    %72 = vector.shape_cast %71 : vector<2x8xf32> to vector<2x8x1xf32>
    %73 = vector.broadcast %72 : vector<2x8x1xf32> to vector<2x8x128xf32>
    %74 = arith.subf %70, %73 : vector<2x8x128xf32>
    %75 = math.exp %74 : vector<2x8x128xf32>
    %cst_49 = arith.constant dense<0.000000e+00> : vector<2x8xf32>
    %76 = vector.multi_reduction <add>, %75, %cst_49 [2] : vector<2x8x128xf32> to vector<2x8xf32>
    %77 = vector.shape_cast %76 : vector<2x8xf32> to vector<2x8x1xf32>
    %78 = tpu.reciprocal %77 {approx = true} : vector<2x8x1xf32> -> vector<2x8x1xf32>
    %79 = vector.broadcast %78 : vector<2x8x1xf32> to vector<2x8x128xf32>
    %80 = arith.mulf %75, %79 : vector<2x8x128xf32>
    %c0_50 = arith.constant 0 : index
    %c0_51 = arith.constant 0 : index
    %c0_52 = arith.constant 0 : index
    %81 = vector.load %arg16[%c0_50, %c0_51, %c0_52] : memref<2x8x128xf32, #tpu.memory_space<vmem>>, vector<2x8x128xf32>
    %82 = arith.addf %81, %80 : vector<2x8x128xf32>
    %c0_53 = arith.constant 0 : index
    %c0_54 = arith.constant 0 : index
    %c0_55 = arith.constant 0 : index
    %83 = vector.load %arg16[%c0_53, %c0_54, %c0_55] : memref<2x8x128xf32, #tpu.memory_space<vmem>>, vector<2x8x128xf32>
    tpu.vector_store %arg16[%c0_53, %c0_54, %c0_55], %82 {strides = array<i32>} : memref<2x8x128xf32, #tpu.memory_space<vmem>>, vector<2x8x128xf32>,
    %cst_56 = arith.constant dense<0.000000e+00> : vector<2x8x16xf32>
    %84 = tpu.matmul %80, %67, %cst_56 {dimension_numbers = #tpu.dot_dimension_numbers<[2], [1], [1], [2], [0, 0, 0, 1, 1, 2], [0], [0]>} : vector<2x8x128xf32>, vector<2x128x16xf32>, vector<2x8x16xf32> -> vector<2x8x16xf32>
    %c0_57 = arith.constant 0 : index
    %c0_58 = arith.constant 0 : index
    %c32 = arith.constant 32 : index
    %85 = vector.load %arg17[%c0_57, %c0_58, %c32] : memref<2x8x64xf32, #tpu.memory_space<vmem>>, vector<2x8x16xf32>
    tpu.vector_store %arg17[%c0_57, %c0_58, %c32], %84 {strides = array<i32>} : memref<2x8x64xf32, #tpu.memory_space<vmem>>, vector<2x8x16xf32>,
    %86 = vector.extract_strided_slice %11 {offsets = [0, 0, 48], sizes = [2, 8, 16], strides = [1, 1, 1]} : vector<2x8x64xf32> to vector<2x8x16xf32>
    %87 = vector.extract_strided_slice %17 {offsets = [0, 0, 48], sizes = [2, 128, 16], strides = [1, 1, 1]} : vector<2x128x64xf32> to vector<2x128x16xf32>
    %88 = vector.extract_strided_slice %23 {offsets = [0, 0, 48], sizes = [2, 128, 16], strides = [1, 1, 1]} : vector<2x128x64xf32> to vector<2x128x16xf32>
    %cst_59 = arith.constant dense<0.000000e+00> : vector<2x8x128xf32>
    %89 = tpu.matmul %86, %87, %cst_59 {dimension_numbers = #tpu.dot_dimension_numbers<[2], [2], [1], [1], [0, 0, 0, 1, 1, 1], [0], [0]>} : vector<2x8x16xf32>, vector<2x128x16xf32>, vector<2x8x128xf32> -> vector<2x8x128xf32>
    %90 = vector.broadcast %24 : vector<2x1x128xf32> to vector<2x8x128xf32>
    %91 = arith.addf %89, %90 : vector<2x8x128xf32>
    %cst_60 = arith.constant dense<0xFF800000> : vector<2x8xf32>
    %92 = vector.multi_reduction <maximumf>, %91, %cst_60 [2] : vector<2x8x128xf32> to vector<2x8xf32>
    %93 = vector.shape_cast %92 : vector<2x8xf32> to vector<2x8x1xf32>
    %94 = vector.broadcast %93 : vector<2x8x1xf32> to vector<2x8x128xf32>
    %95 = arith.subf %91, %94 : vector<2x8x128xf32>
    %96 = math.exp %95 : vector<2x8x128xf32>
    %cst_61 = arith.constant dense<0.000000e+00> : vector<2x8xf32>
    %97 = vector.multi_reduction <add>, %96, %cst_61 [2] : vector<2x8x128xf32> to vector<2x8xf32>
    %98 = vector.shape_cast %97 : vector<2x8xf32> to vector<2x8x1xf32>
    %99 = tpu.reciprocal %98 {approx = true} : vector<2x8x1xf32> -> vector<2x8x1xf32>
    %100 = vector.broadcast %99 : vector<2x8x1xf32> to vector<2x8x128xf32>
    %101 = arith.mulf %96, %100 : vector<2x8x128xf32>
    %c0_62 = arith.constant 0 : index
    %c0_63 = arith.constant 0 : index
    %c0_64 = arith.constant 0 : index
    %102 = vector.load %arg16[%c0_62, %c0_63, %c0_64] : memref<2x8x128xf32, #tpu.memory_space<vmem>>, vector<2x8x128xf32>
    %103 = arith.addf %102, %101 : vector<2x8x128xf32>
    %c0_65 = arith.constant 0 : index
    %c0_66 = arith.constant 0 : index
    %c0_67 = arith.constant 0 : index
    %104 = vector.load %arg16[%c0_65, %c0_66, %c0_67] : memref<2x8x128xf32, #tpu.memory_space<vmem>>, vector<2x8x128xf32>
    tpu.vector_store %arg16[%c0_65, %c0_66, %c0_67], %103 {strides = array<i32>} : memref<2x8x128xf32, #tpu.memory_space<vmem>>, vector<2x8x128xf32>,
    %cst_68 = arith.constant dense<0.000000e+00> : vector<2x8x16xf32>
    %105 = tpu.matmul %101, %88, %cst_68 {dimension_numbers = #tpu.dot_dimension_numbers<[2], [1], [1], [2], [0, 0, 0, 1, 1, 2], [0], [0]>} : vector<2x8x128xf32>, vector<2x128x16xf32>, vector<2x8x16xf32> -> vector<2x8x16xf32>
    %c0_69 = arith.constant 0 : index
    %c0_70 = arith.constant 0 : index
    %c48 = arith.constant 48 : index
    %106 = vector.load %arg17[%c0_69, %c0_70, %c48] : memref<2x8x64xf32, #tpu.memory_space<vmem>>, vector<2x8x16xf32>
    tpu.vector_store %arg17[%c0_69, %c0_70, %c48], %105 {strides = array<i32>} : memref<2x8x64xf32, #tpu.memory_space<vmem>>, vector<2x8x16xf32>,
    %c0_71 = arith.constant 0 : index
    %c0_72 = arith.constant 0 : index
    %c0_73 = arith.constant 0 : index
    %107 = vector.load %arg16[%c0_71, %c0_72, %c0_73] : memref<2x8x128xf32, #tpu.memory_space<vmem>>, vector<2x8x128xf32>
    %cst_74 = arith.constant 2.500000e-01 : f32
    %108 = vector.broadcast %cst_74 : f32 to vector<2x8x128xf32>
    %109 = arith.mulf %107, %108 : vector<2x8x128xf32>
    %c0_75 = arith.constant 0 : index
    %c0_76 = arith.constant 0 : index
    %c0_77 = arith.constant 0 : index
    %110 = vector.load %arg16[%c0_75, %c0_76, %c0_77] : memref<2x8x128xf32, #tpu.memory_space<vmem>>, vector<2x8x128xf32>
    tpu.vector_store %arg16[%c0_75, %c0_76, %c0_77], %109 {strides = array<i32>} : memref<2x8x128xf32, #tpu.memory_space<vmem>>, vector<2x8x128xf32>,
    %c0_78 = arith.constant 0 : index
    %c0_79 = arith.constant 0 : index
    %c0_80 = arith.constant 0 : index
    %111 = vector.load %arg17[%c0_78, %c0_79, %c0_80] : memref<2x8x64xf32, #tpu.memory_space<vmem>>, vector<2x8x64xf32>
    %112 = vector.shape_cast %111 : vector<2x8x64xf32> to vector<16x64xf32>
    %c0_81 = arith.constant 0 : index
    %c0_82 = arith.constant 0 : index
    %113 = vector.load %arg11[%c0_81, %c0_82] : memref<64x32xf32, #tpu.memory_space<vmem>>, vector<64x32xf32>
    %cst_83 = arith.constant dense<0.000000e+00> : vector<16x32xf32>
    %114 = tpu.matmul %112, %113, %cst_83 {dimension_numbers = #tpu.dot_dimension_numbers<[1], [0], [0], [1], [0, 0, 1, 1], [], []>} : vector<16x64xf32>, vector<64x32xf32>, vector<16x32xf32> -> vector<16x32xf32>
    %c0_84 = arith.constant 0 : index
    %c0_85 = arith.constant 0 : index
    %115 = vector.load %arg12[%c0_84, %c0_85] : memref<1x32xf32, #tpu.memory_space<vmem>>, vector<1x32xf32>
    %116 = vector.broadcast %115 : vector<1x32xf32> to vector<16x32xf32>
    %117 = arith.addf %114, %116 : vector<16x32xf32>
    %118 = arith.addf %117, %1 : vector<16x32xf32>
    %cst_86 = arith.constant dense<0.000000e+00> : vector<16xf32>
    %119 = vector.multi_reduction <add>, %118, %cst_86 [1] : vector<16x32xf32> to vector<16xf32>
    %120 = vector.shape_cast %119 : vector<16xf32> to vector<16x1xf32>
    %cst_87 = arith.constant 3.200000e+01 : f32
    %121 = vector.broadcast %cst_87 : f32 to vector<16x1xf32>
    %122 = arith.divf %120, %121 : vector<16x1xf32>
    %123 = vector.broadcast %122 : vector<16x1xf32> to vector<16x32xf32>
    %124 = arith.subf %118, %123 : vector<16x32xf32>
    %125 = arith.mulf %124, %124 : vector<16x32xf32>
    %cst_88 = arith.constant dense<0.000000e+00> : vector<16xf32>
    %126 = vector.multi_reduction <add>, %125, %cst_88 [1] : vector<16x32xf32> to vector<16xf32>
    %127 = vector.shape_cast %126 : vector<16xf32> to vector<16x1xf32>
    %cst_89 = arith.constant 3.200000e+01 : f32
    %128 = vector.broadcast %cst_89 : f32 to vector<16x1xf32>
    %129 = arith.divf %127, %128 : vector<16x1xf32>
    %130 = vector.broadcast %122 : vector<16x1xf32> to vector<16x32xf32>
    %131 = arith.subf %118, %130 : vector<16x32xf32>
    %cst_90 = arith.constant 9.99999974E-6 : f32
    %132 = vector.broadcast %cst_90 : f32 to vector<16x1xf32>
    %133 = arith.addf %129, %132 : vector<16x1xf32>
    %134 = math.rsqrt %133 : vector<16x1xf32>
    %135 = vector.broadcast %134 : vector<16x1xf32> to vector<16x32xf32>
    %136 = arith.mulf %131, %135 : vector<16x32xf32>
    %c0_91 = arith.constant 0 : index
    %c0_92 = arith.constant 0 : index
    %137 = vector.load %arg13[%c0_91, %c0_92] : memref<1x32xf32, #tpu.memory_space<vmem>>, vector<1x32xf32>
    %138 = vector.broadcast %137 : vector<1x32xf32> to vector<16x32xf32>
    %139 = arith.mulf %136, %138 : vector<16x32xf32>
    %c0_93 = arith.constant 0 : index
    %c0_94 = arith.constant 0 : index
    %140 = vector.load %arg14[%c0_93, %c0_94] : memref<1x32xf32, #tpu.memory_space<vmem>>, vector<1x32xf32>
    %141 = vector.broadcast %140 : vector<1x32xf32> to vector<16x32xf32>
    %142 = arith.addf %139, %141 : vector<16x32xf32>
    %143 = vector.shape_cast %142 : vector<16x32xf32> to vector<2x8x32xf32>
    %c0_95 = arith.constant 0 : index
    %c0_96 = arith.constant 0 : index
    %c0_97 = arith.constant 0 : index
    %144 = vector.load %arg15[%c0_95, %c0_96, %c0_97] : memref<2x8x32xf32, #tpu.memory_space<vmem>>, vector<2x8x32xf32>
    tpu.vector_store %arg15[%c0_95, %c0_96, %c0_97], %143 {strides = array<i32>} : memref<2x8x32xf32, #tpu.memory_space<vmem>>, vector<2x8x32xf32>,
    return
  }
  func.func @transform_0(%arg0: i32) -> (i32, i32, i32) {
    %c0_i32 = arith.constant 0 : i32
    %c0_i32_0 = arith.constant 0 : i32
    %c0_i32_1 = arith.constant 0 : i32
    return %arg0, %c0_i32, %c0_i32_0 : i32, i32, i32
  }
  func.func @transform_1(%arg0: i32) -> (i32, i32, i32) {
    %c0_i32 = arith.constant 0 : i32
    %c0_i32_0 = arith.constant 0 : i32
    %c0_i32_1 = arith.constant 0 : i32
    return %arg0, %c0_i32, %c0_i32_0 : i32, i32, i32
  }
  func.func @transform_2(%arg0: i32) -> (i32, i32, i32) {
    %c0_i32 = arith.constant 0 : i32
    %c0_i32_0 = arith.constant 0 : i32
    %c0_i32_1 = arith.constant 0 : i32
    return %arg0, %c0_i32, %c0_i32_0 : i32, i32, i32
  }
  func.func @transform_3(%arg0: i32) -> (i32, i32, i32) {
    %c0_i32 = arith.constant 0 : i32
    %c0_i32_0 = arith.constant 0 : i32
    %c0_i32_1 = arith.constant 0 : i32
    return %arg0, %c0_i32, %c0_i32_0 : i32, i32, i32
  }
  func.func @transform_4(%arg0: i32) -> (i32, i32) {
    %c0_i32 = arith.constant 0 : i32
    %c0_i32_0 = arith.constant 0 : i32
    %c0_i32_1 = arith.constant 0 : i32
    return %c0_i32, %c0_i32_0 : i32, i32
  }
  func.func @transform_5(%arg0: i32) -> (i32, i32) {
    %c0_i32 = arith.constant 0 : i32
    %c0_i32_0 = arith.constant 0 : i32
    %c0_i32_1 = arith.constant 0 : i32
    return %c0_i32, %c0_i32_0 : i32, i32
  }
  func.func @transform_6(%arg0: i32) -> (i32, i32) {
    %c0_i32 = arith.constant 0 : i32
    %c0_i32_0 = arith.constant 0 : i32
    %c0_i32_1 = arith.constant 0 : i32
    return %c0_i32, %c0_i32_0 : i32, i32
  }
  func.func @transform_7(%arg0: i32) -> (i32, i32) {
    %c0_i32 = arith.constant 0 : i32
    %c0_i32_0 = arith.constant 0 : i32
    %c0_i32_1 = arith.constant 0 : i32
    return %c0_i32, %c0_i32_0 : i32, i32
  }
  func.func @transform_8(%arg0: i32) -> (i32, i32) {
    %c0_i32 = arith.constant 0 : i32
    %c0_i32_0 = arith.constant 0 : i32
    %c0_i32_1 = arith.constant 0 : i32
    return %c0_i32, %c0_i32_0 : i32, i32
  }
  func.func @transform_9(%arg0: i32) -> (i32, i32) {
    %c0_i32 = arith.constant 0 : i32
    %c0_i32_0 = arith.constant 0 : i32
    %c0_i32_1 = arith.constant 0 : i32
    return %c0_i32, %c0_i32_0 : i32, i32
  }
  func.func @transform_10(%arg0: i32) -> (i32, i32) {
    %c0_i32 = arith.constant 0 : i32
    %c0_i32_0 = arith.constant 0 : i32
    %c0_i32_1 = arith.constant 0 : i32
    return %c0_i32, %c0_i32_0 : i32, i32
  }
  func.func @transform_11(%arg0: i32) -> (i32, i32) {
    %c0_i32 = arith.constant 0 : i32
    %c0_i32_0 = arith.constant 0 : i32
    %c0_i32_1 = arith.constant 0 : i32
    return %c0_i32, %c0_i32_0 : i32, i32
  }
  func.func @transform_12(%arg0: i32) -> (i32, i32) {
    %c0_i32 = arith.constant 0 : i32
    %c0_i32_0 = arith.constant 0 : i32
    %c0_i32_1 = arith.constant 0 : i32
    return %c0_i32, %c0_i32_0 : i32, i32
  }
  func.func @transform_13(%arg0: i32) -> (i32, i32) {
    %c0_i32 = arith.constant 0 : i32
    %c0_i32_0 = arith.constant 0 : i32
    %c0_i32_1 = arith.constant 0 : i32
    return %c0_i32, %c0_i32_0 : i32, i32
  }
  func.func @transform_14(%arg0: i32) -> (i32, i32, i32) {
    %c0_i32 = arith.constant 0 : i32
    %c0_i32_0 = arith.constant 0 : i32
    %c0_i32_1 = arith.constant 0 : i32
    return %arg0, %c0_i32, %c0_i32_0 : i32, i32, i32
  }
  func.func @transform_15(%arg0: i32) -> (i32, i32, i32) {
    %c0_i32 = arith.constant 0 : i32
    %c0_i32_0 = arith.constant 0 : i32
    %c0_i32_1 = arith.constant 0 : i32
    return %arg0, %c0_i32, %c0_i32_0 : i32, i32, i32
  }
}

</mosaic_0001>

<bundles_post_ra>
// kernel: tpu_custom_call.1
= control target key start
LH: loop header
LB: loop body
LE: loop exit
PB: predicated region body
PF: predicated region fallthrough
CT: control target
= control target key end

     0   :  { %21 = vsyncpa [#allocation4], 0  ;;  %vm128_vm0 = vcmask 261120   ;;  %s6718_s0 = inlined_call_operand.vmem [shape: f32[2,8,32], index: 0, kind: input, shape index: {}]   ;;  %s6719_s1 = inlined_call_operand.vmem [shape: f32[2,128,32], index: 1, kind: input, shape index: {}]   ;;  %s6720_s2 = inlined_call_operand.vmem [shape: f32[2,128,32], index: 2, kind: input, shape index: {}]   ;;  %s6721_s3 = inlined_call_operand.vmem [shape: f32[2,1,128], index: 3, kind: input, shape index: {}]   ;;  %s6722_s4 = inlined_call_operand.vmem [shape: f32[32,64], index: 4, kind: input, shape index: {}]   ;;  %s6723_s5 = inlined_call_operand.vmem [shape: f32[1,64], index: 5, kind: input, shape index: {}]   ;;  %s6724_s6 = inlined_call_operand.vmem [shape: f32[32,64], index: 6, kind: input, shape index: {}]   ;;  %s6725_s7 = inlined_call_operand.vmem [shape: f32[1,64], index: 7, kind: input, shape index: {}]   ;;  %s6726_s8 = inlined_call_operand.vmem [shape: f32[32,64], index: 8, kind: input, shape index: {}]   ;;  %s6727_s9 = inlined_call_operand.vmem [shape: f32[1,64], index: 9, kind: input, shape index: {}]   ;;  %s6728_s10 = inlined_call_operand.vmem [shape: f32[64,32], index: 10, kind: input, shape index: {}]   ;;  %s6729_s11 = inlined_call_operand.vmem [shape: f32[1,32], index: 11, kind: input, shape index: {}]   ;;  %s6730_s12 = inlined_call_operand.vmem [shape: f32[1,32], index: 12, kind: input, shape index: {}]   ;;  %s6731_s13 = inlined_call_operand.vmem [shape: f32[1,32], index: 13, kind: input, shape index: {}]   ;;  %s6732_s14 = inlined_call_operand.hbm [shape: f32[2,8,32], index: 14, kind: output, shape index: {0}]   ;;  %s6733_s15 = inlined_call_operand.hbm [shape: f32[2,8,128], index: 15, kind: output, shape index: {1}]  }
   0x1   :  { %v210_v0 = vld [vmem:[%s6724_s6] sm:$0xff]  ;;  %v211_v1 = vld [vmem:[%s6724_s6 + $0x8] sm:$0xff]  ;;  %v212_v2 = vld [vmem:[%s6724_s6 + $0x10] sm:$0xff] }
   0x2   :  { %v4434_v3 = vpack.c.bf16 %v211_v1, %v210_v0  ;;  %v213_v4 = vld [vmem:[%s6724_s6 + $0x18] sm:$0xff]  ;;  %v53_v5 = vld [vmem:[%s6719_s1] sm:$0xff]  ;;  %v54_v7 = vld [vmem:[%s6719_s1 + $0x8] sm:$0xff] }
   0x3   :  { %v4438_v6 = vpack.c.bf16 %v213_v4, %v212_v2  ;;  %3743 = vmatprep.mubr.msk.f32.mxu1 %vm128_vm0, %v53_v5  ;;  %v55_v8 = vld [vmem:[%s6719_s1 + $0x10] sm:$0xff]  ;;  %v117_v9 = vld [vmem:[%s6722_s4] sm:$0xff]  ;;  %v118_v10 = vld [vmem:[%s6722_s4 + $0x8] sm:$0xff] }
   0x4   :  { %4435 = vmatprep.subr.bf16.mxu1 %v4434_v3  ;;  %v4426_v11 = vpack.c.bf16 %v118_v10, %v117_v9  ;;  %v119_v12 = vld [vmem:[%s6722_s4 + $0x10] sm:$0xff]  ;;  %v120_v13 = vld [vmem:[%s6722_s4 + $0x18] sm:$0xff]  ;;  %v51_v15 = vld [vmem:[%s6718_s0] sm:$0xff] }
   0x5   :  { %4437 = vmatpush3.bf16.msra.mxu1 %v4434_v3  ;;  %v4430_v14 = vpack.c.bf16 %v120_v13, %v119_v12  ;;  %v56_v16 = vld [vmem:[%s6719_s1 + $0x18] sm:$0xff]  ;;  %v57_v17 = vld [vmem:[%s6719_s1 + $0x20] sm:$0xff]  ;;  %3732 = vmatprep.mubr.msk.f32.mxu0 %vm128_vm0, %v51_v15 }
   0x6   :  { %4439 = vmatprep.subr.bf16.mxu1 %v4438_v6  ;;  %4427 = vmatprep.subr.bf16.mxu0 %v4426_v11 }
   0x7   :  { %4429 = vmatpush3.bf16.msra.mxu0 %v4426_v11 }
   0x8   :  { %4431 = vmatprep.subr.bf16.mxu0 %v4430_v14 }
   0x9   :  { %4441 = vmatpush3.bf16.msra.mxu1 %v4438_v6 }
   0xc   :  { %3744 = vmatmul.mubr.msk.f32.vlgmr.msra.gmra.mrb[0].mxu1 %vm128_vm0, %v54_v7 }
   0xd   :  { %3746 = vmatprep.mubr.msk.f32.mxu1 %vm128_vm0, %v55_v8 }
   0xe   :  { %22 = vsyncpa [#allocation6], 0  ;;  %v58_v18 = vld [vmem:[%s6719_s1 + $0x28] sm:$0xff]  ;;  %v59_v19 = vld [vmem:[%s6719_s1 + $0x30] sm:$0xff]  ;;  %4433 = vmatpush3.bf16.msra.mxu0 %v4430_v14  ;;  %v5495_v46 = vmov 0.0|0.0   ;;  %vm5496_vm1 = vmmov 0  }
   0xf   :  { %v52_v20 = vld [vmem:[%s6718_s0 + $0x8] sm:$0xff]  ;;  %v60_v21 = vld [vmem:[%s6719_s1 + $0x38] sm:$0xff]  ;;  %v61_v22 = vld [vmem:[%s6719_s1 + $0x40] sm:$0xff]  ;;  %4450 = vmatprep.subr.bf16.mxu1 %v5495_v46  ;;  %v5497_v6 = vmov 0.0   ;;  %vm888_vm2 = vcmask 130048   ;;  %s5499_s21 = smov 96  }
  0x10   :  { %3747 = vmatmul.mubr.msk.f32.gmra.mrb[2].mxu1 %vm128_vm0, %v56_v16  ;;  %v62_v23 = vld [vmem:[%s6719_s1 + $0x48] sm:$0xff]  ;;  %v63_v24 = vld [vmem:[%s6719_s1 + $0x50] sm:$0xff]  ;;  %v64_v25 = vld [vmem:[%s6719_s1 + $0x58] sm:$0xff]  ;;  %s5500_s22 = smov 80   ;;  %s5502_s26 = smov 32   ;;  %vm1869_vm4 = vcmask 261248  }
  0x11   :  { %3749 = vmatprep.mubr.msk.f32.mxu1 %vm128_vm0, %v57_v17  ;;  %3733 = vmatmul.mubr.msk.f32.vlgmr.msra.gmra.mrb[0].mxu0 %vm128_vm0, %v52_v20  ;;  %v65_v26 = vld [vmem:[%s6719_s1 + $0x60] sm:$0xff]  ;;  %v66_v27 = vld [vmem:[%s6719_s1 + $0x68] sm:$0xff]  ;;  %v67_v28 = vld [vmem:[%s6719_s1 + $0x70] sm:$0xff]  ;;  %vm2416_vm5 = vcmask 392448   ;;  %vm2963_vm6 = vcmask 523648   ;;  %vm2989_vm7 = vcmask 523264  }
  0x12   :  { %v68_v29 = vld [vmem:[%s6719_s1 + $0x78] sm:$0xff]  ;;  %v69_v30 = vld [vmem:[%s6719_s1 + $0x80] sm:$0xff]  ;;  %v70_v31 = vld [vmem:[%s6719_s1 + $0x88] sm:$0xff] }
  0x13   :  { %v71_v32 = vld [vmem:[%s6719_s1 + $0x90] sm:$0xff]  ;;  %v72_v33 = vld [vmem:[%s6719_s1 + $0x98] sm:$0xff]  ;;  %v73_v34 = vld [vmem:[%s6719_s1 + $0xa0] sm:$0xff] }
  0x14   :  { %3750 = vmatmul.mubr.msk.f32.gmra.mrb[4].mxu1 %vm128_vm0, %v58_v18  ;;  %v74_v35 = vld [vmem:[%s6719_s1 + $0xa8] sm:$0xff]  ;;  %v75_v36 = vld [vmem:[%s6719_s1 + $0xb0] sm:$0xff]  ;;  %v76_v37 = vld [vmem:[%s6719_s1 + $0xb8] sm:$0xff] }
  0x15   :  { %3752 = vmatprep.mubr.msk.f32.mxu1 %vm128_vm0, %v59_v19  ;;  %v77_v38 = vld [vmem:[%s6719_s1 + $0xc0] sm:$0xff]  ;;  %v78_v39 = vld [vmem:[%s6719_s1 + $0xc8] sm:$0xff]  ;;  %v79_v40 = vld [vmem:[%s6719_s1 + $0xd0] sm:$0xff] }
  0x16   :  { %v80_v41 = vld [vmem:[%s6719_s1 + $0xd8] sm:$0xff]  ;;  %v81_v42 = vld [vmem:[%s6719_s1 + $0xe0] sm:$0xff]  ;;  %v82_v43 = vld [vmem:[%s6719_s1 + $0xe8] sm:$0xff] }
  0x17   :  { %v83_v44 = vld [vmem:[%s6719_s1 + $0xf0] sm:$0xff]  ;;  %v84_v45 = vld [vmem:[%s6719_s1 + $0xf8] sm:$0xff]  ;;  %v542_v47 = vld [vmem:[%s6726_s8] sm:$0xff] }
  0x18   :  { %3753 = vmatmul.mubr.msk.f32.gmra.mrb[6].mxu1 %vm128_vm0, %v60_v21  ;;  %v543_v48 = vld [vmem:[%s6726_s8 + $0x8] sm:$0xff]  ;;  %v544_v50 = vld [vmem:[%s6726_s8 + $0x10] sm:$0xff]  ;;  %v545_v51 = vld [vmem:[%s6726_s8 + $0x18] sm:$0xff] }
  0x19   :  { %3755 = vmatprep.mubr.msk.f32.mxu1 %vm128_vm0, %v61_v22  ;;  %v4442_v49 = vpack.c.bf16 %v543_v48, %v542_v47  ;;  %v4446_v52 = vpack.c.bf16 %v545_v51, %v544_v50  ;;  %v85_v53 = vld [vmem:[%s6720_s2] sm:$0xff]  ;;  %v86_v54 = vld [vmem:[%s6720_s2 + $0x8] sm:$0xff]  ;;  %v87_v55 = vld [vmem:[%s6720_s2 + $0x10] sm:$0xff] }
  0x1a   :  { %3799 = vmatprep.mubr.msk.f32.mxu0 %vm128_vm0, %v85_v53  ;;  %v88_v56 = vld [vmem:[%s6720_s2 + $0x18] sm:$0xff]  ;;  %v89_v57 = vld [vmem:[%s6720_s2 + $0x20] sm:$0xff]  ;;  %v90_v58 = vld [vmem:[%s6720_s2 + $0x28] sm:$0xff] }
  0x1b   :  { %4443 = vmatprep.subr.bf16.mxu0 %v4442_v49  ;;  %v91_v59 = vld [vmem:[%s6720_s2 + $0x30] sm:$0xff]  ;;  %v92_v60 = vld [vmem:[%s6720_s2 + $0x38] sm:$0xff]  ;;  %v93_v61 = vld [vmem:[%s6720_s2 + $0x40] sm:$0xff] }
  0x1c   :  { %3756 = vmatmul.mubr.msk.f32.gmra.mrb[8].mxu1 %vm128_vm0, %v62_v23  ;;  %4445 = vmatpush3.bf16.msra.mxu0 %v4442_v49  ;;  %v94_v62 = vld [vmem:[%s6720_s2 + $0x48] sm:$0xff]  ;;  %v95_v63 = vld [vmem:[%s6720_s2 + $0x50] sm:$0xff]  ;;  %v96_v0 = vld [vmem:[%s6720_s2 + $0x58] sm:$0xff] }
  0x1d   :  { %3758 = vmatprep.mubr.msk.f32.mxu1 %vm128_vm0, %v63_v24  ;;  %4447 = vmatprep.subr.bf16.mxu0 %v4446_v52  ;;  %v97_v1 = vld [vmem:[%s6720_s2 + $0x60] sm:$0xff]  ;;  %v98_v2 = vld [vmem:[%s6720_s2 + $0x68] sm:$0xff]  ;;  %v99_v3 = vld [vmem:[%s6720_s2 + $0x70] sm:$0xff] }
  0x1e   :  { %v100_v4 = vld [vmem:[%s6720_s2 + $0x78] sm:$0xff]  ;;  %v101_v5 = vld [vmem:[%s6720_s2 + $0x80] sm:$0xff]  ;;  %v102_v7 = vld [vmem:[%s6720_s2 + $0x88] sm:$0xff] }
  0x1f   :  { %v103_v8 = vld [vmem:[%s6720_s2 + $0x90] sm:$0xff]  ;;  %v104_v9 = vld [vmem:[%s6720_s2 + $0x98] sm:$0xff]  ;;  %v105_v10 = vld [vmem:[%s6720_s2 + $0xa0] sm:$0xff] }
  0x20   :  { %3759 = vmatmul.mubr.msk.f32.gmra.mrb[10].mxu1 %vm128_vm0, %v64_v25  ;;  %4449 = vmatpush3.bf16.msra.mxu0 %v4446_v52  ;;  %v106_v11 = vld [vmem:[%s6720_s2 + $0xa8] sm:$0xff]  ;;  %v107_v12 = vld [vmem:[%s6720_s2 + $0xb0] sm:$0xff]  ;;  %v108_v13 = vld [vmem:[%s6720_s2 + $0xb8] sm:$0xff] }
  0x21   :  { %3761 = vmatprep.mubr.msk.f32.mxu1 %vm128_vm0, %v65_v26  ;;  %4482 = vmatprep.subr.bf16.mxu0 %v5495_v46  ;;  %v109_v14 = vld [vmem:[%s6720_s2 + $0xc0] sm:$0xff]  ;;  %v110_v15 = vld [vmem:[%s6720_s2 + $0xc8] sm:$0xff]  ;;  %v111_v16 = vld [vmem:[%s6720_s2 + $0xd0] sm:$0xff] }
  0x22   :  { %v112_v17 = vld [vmem:[%s6720_s2 + $0xd8] sm:$0xff]  ;;  %v113_v18 = vld [vmem:[%s6720_s2 + $0xe0] sm:$0xff]  ;;  %v114_v19 = vld [vmem:[%s6720_s2 + $0xe8] sm:$0xff] }
  0x23   :  { %3800 = vmatmul.mubr.msk.f32.vlgmr.msra.gmra.mrb[2].mxu0 %vm128_vm0, %v86_v54  ;;  %v115_v20 = vld [vmem:[%s6720_s2 + $0xf0] sm:$0xff]  ;;  %v116_v21 = vld [vmem:[%s6720_s2 + $0xf8] sm:$0xff]  ;;  %v5897_v22 = vld [vmem:[%s6725_s7] ss:$0 sm:$0xff]  ;;  %s5498_s2 = smov 112   ;;  %s5503_s7 = smov 48  }
  0x24   :  { %3762 = vmatmul.mubr.msk.f32.gmra.mrb[12].mxu1 %vm128_vm0, %v66_v27  ;;  %3802 = vmatprep.mubr.msk.f32.mxu0 %vm128_vm0, %v87_v55  ;;  %vm5903_vm3 = vmpackc.low %vm888_vm2, %vm888_vm2 }
  0x25   :  { %3764 = vmatprep.mubr.msk.f32.mxu1 %vm128_vm0, %v67_v28 }
  0x27   :  { %3803 = vmatmul.mubr.msk.f32.gmra.mrb[4].mxu0 %vm128_vm0, %v88_v56 }
  0x28   :  { %3765 = vmatmul.mubr.msk.f32.gmra.mrb[14].mxu1 %vm128_vm0, %v68_v29  ;;  %3805 = vmatprep.mubr.msk.f32.mxu0 %vm128_vm0, %v89_v57 }
  0x29   :  { %3767 = vmatprep.mubr.msk.f32.mxu1 %vm128_vm0, %v69_v30 }
  0x2b   :  { %3806 = vmatmul.mubr.msk.f32.gmra.mrb[6].mxu0 %vm128_vm0, %v90_v58 }
  0x2c   :  { %3768 = vmatmul.mubr.msk.f32.gmra.mrb[16].mxu1 %vm128_vm0, %v70_v31  ;;  %3808 = vmatprep.mubr.msk.f32.mxu0 %vm128_vm0, %v91_v59 }
  0x2d   :  { %3770 = vmatprep.mubr.msk.f32.mxu1 %vm128_vm0, %v71_v32 }
  0x2f   :  { %3809 = vmatmul.mubr.msk.f32.gmra.mrb[8].mxu0 %vm128_vm0, %v92_v60 }
  0x30   :  { %3771 = vmatmul.mubr.msk.f32.gmra.mrb[18].mxu1 %vm128_vm0, %v72_v33  ;;  %3811 = vmatprep.mubr.msk.f32.mxu0 %vm128_vm0, %v93_v61 }
  0x31   :  { %3773 = vmatprep.mubr.msk.f32.mxu1 %vm128_vm0, %v73_v34 }
  0x33   :  { %3812 = vmatmul.mubr.msk.f32.gmra.mrb[10].mxu0 %vm128_vm0, %v94_v62 }
  0x34   :  { %3774 = vmatmul.mubr.msk.f32.gmra.mrb[20].mxu1 %vm128_vm0, %v74_v35  ;;  %3814 = vmatprep.mubr.msk.f32.mxu0 %vm128_vm0, %v95_v63 }
  0x35   :  { %3776 = vmatprep.mubr.msk.f32.mxu1 %vm128_vm0, %v75_v36 }
  0x37   :  { %3815 = vmatmul.mubr.msk.f32.gmra.mrb[12].mxu0 %vm128_vm0, %v96_v0 }
  0x38   :  { %3777 = vmatmul.mubr.msk.f32.gmra.mrb[22].mxu1 %vm128_vm0, %v76_v37  ;;  %3817 = vmatprep.mubr.msk.f32.mxu0 %vm128_vm0, %v97_v1 }
  0x39   :  { %3779 = vmatprep.mubr.msk.f32.mxu1 %vm128_vm0, %v77_v38 }
  0x3b   :  { %3818 = vmatmul.mubr.msk.f32.gmra.mrb[14].mxu0 %vm128_vm0, %v98_v2 }
  0x3c   :  { %3780 = vmatmul.mubr.msk.f32.gmra.mrb[24].mxu1 %vm128_vm0, %v78_v39  ;;  %3820 = vmatprep.mubr.msk.f32.mxu0 %vm128_vm0, %v99_v3 }
  0x3d   :  { %3782 = vmatprep.mubr.msk.f32.mxu1 %vm128_vm0, %v79_v40 }
  0x3f   :  { %3821 = vmatmul.mubr.msk.f32.gmra.mrb[16].mxu0 %vm128_vm0, %v100_v4 }
  0x40   :  { %3783 = vmatmul.mubr.msk.f32.gmra.mrb[26].mxu1 %vm128_vm0, %v80_v41  ;;  %3823 = vmatprep.mubr.msk.f32.mxu0 %vm128_vm0, %v101_v5 }
  0x41   :  { %3785 = vmatprep.mubr.msk.f32.mxu1 %vm128_vm0, %v81_v42 }
  0x43   :  { %3824 = vmatmul.mubr.msk.f32.gmra.mrb[18].mxu0 %vm128_vm0, %v102_v7 }
  0x44   :  { %3786 = vmatmul.mubr.msk.f32.gmra.mrb[28].mxu1 %vm128_vm0, %v82_v43  ;;  %3826 = vmatprep.mubr.msk.f32.mxu0 %vm128_vm0, %v103_v8 }
  0x45   :  { %3788 = vmatprep.mubr.msk.f32.mxu1 %vm128_vm0, %v83_v44 }
  0x47   :  { %3827 = vmatmul.mubr.msk.f32.gmra.mrb[20].mxu0 %vm128_vm0, %v104_v9 }
  0x48   :  { %3789 = vmatmul.mubr.msk.f32.gmra.mrb[30].mxu1 %vm128_vm0, %v84_v45  ;;  %3829 = vmatprep.mubr.msk.f32.mxu0 %vm128_vm0, %v105_v10 }
  0x49   :  { %3879 = vmatprep.mubr.msk.f32.mxu1 %vm5496_vm1, %v5497_v6 }
  0x4b   :  { %3830 = vmatmul.mubr.msk.f32.gmra.mrb[22].mxu0 %vm128_vm0, %v106_v11 }
  0x4c   :  { %3832 = vmatprep.mubr.msk.f32.mxu0 %vm128_vm0, %v107_v12 }
  0x4f   :  { %3833 = vmatmul.mubr.msk.f32.gmra.mrb[24].mxu0 %vm128_vm0, %v108_v13 }
  0x50   :  { %3835 = vmatprep.mubr.msk.f32.mxu0 %vm128_vm0, %v109_v14 }
  0x53   :  { %3836 = vmatmul.mubr.msk.f32.gmra.mrb[26].mxu0 %vm128_vm0, %v110_v15 }
  0x54   :  { %3838 = vmatprep.mubr.msk.f32.mxu0 %vm128_vm0, %v111_v16 }
  0x57   :  { %3839 = vmatmul.mubr.msk.f32.gmra.mrb[28].mxu0 %vm128_vm0, %v112_v17 }
  0x58   :  { %3841 = vmatprep.mubr.msk.f32.mxu0 %vm128_vm0, %v113_v18 }
  0x5b   :  { %3842 = vmatmul.mubr.msk.f32.gmra.mrb[30].mxu0 %vm128_vm0, %v114_v19 }
  0x5c   :  { %3844 = vmatprep.mubr.msk.f32.mxu0 %vm128_vm0, %v115_v20 }
  0x5f   :  { %3845 = vmatmul.mubr.msk.f32.gmra.mrb[32].mxu0 %vm128_vm0, %v116_v21 }
  0x60   :  { %3914 = vmatprep.mubr.msk.f32.mxu0 %vm5496_vm1, %v5497_v6 }
  0xdf   :  { %v3745_v23 = vpop.f32.mrb[0].mxu1 }
  0xe0   :  { %v389_v24 = vadd.f32 %v3745_v23, %v5897_v22  ;;  %v383_v25 = vpop.f32.mrb[1].mxu1 }
  0xe1   :  { %v384_v26 = vadd.f32 %v5897_v22, %v383_v25 }
  0xe3   :  { %v4451_v28 = vpack.c.bf16 %v389_v24, %v384_v26  ;;  %v3748_v29 = vpop.f32.mrb[2].mxu1  ;;  %v5907_v30 = vpack.i.bf16 %v389_v24, %v384_v26 }
  0xe4   :  { %v399_v31 = vadd.f32 %v3748_v29, %v5897_v22  ;;  %v393_v32 = vpop.f32.mrb[3].mxu1  ;;  %v5917_v39 = vpop.f32.mrb[0].mxu0 }
  0xe5   :  { %v394_v33 = vadd.f32 %v5897_v22, %v393_v32  ;;  %4453 = vmatpush3.bf16.xpose.msk.msra.mxu1 %vm5903_vm3, %v4451_v28  ;;  %v5920_v41 = vpop.f32.mrb[1].mxu0 }
  0xe6   :  { %4454 = vmatprep.subr.bf16.mxu1 %v5495_v46 }
  0xe7   :  { %v4455_v34 = vpack.c.bf16 %v399_v31, %v394_v33  ;;  %v3751_v35 = vpop.f32.mrb[4].mxu1  ;;  %v5914_v36 = vpack.i.bf16 %v399_v31, %v394_v33 }
  0xe8   :  { %v409_v37 = vadd.f32 %v3751_v35, %v5897_v22  ;;  %v403_v38 = vpop.f32.mrb[5].mxu1 }
  0xe9   :  { %v404_v40 = vadd.f32 %v5897_v22, %v403_v38 }
  0xeb   :  { %v4459_v42 = vpack.c.bf16 %v409_v37, %v404_v40  ;;  %v3754_v43 = vpop.f32.mrb[6].mxu1  ;;  %v5922_v44 = vpack.i.bf16 %v409_v37, %v404_v40 }
  0xec   :  { %v419_v45 = vadd.f32 %v3754_v43, %v5897_v22  ;;  %v413_v47 = vpop.f32.mrb[7].mxu1 }
  0xed   :  { %v414_v48 = vadd.f32 %v5897_v22, %v413_v47  ;;  %4457 = vmatpush3.bf16.xpose.msk.msra.mxu1 %vm5903_vm3, %v4455_v34 }
  0xee   :  { %4458 = vmatprep.subr.bf16.mxu1 %v5495_v46 }
  0xef   :  { %v4463_v49 = vpack.c.bf16 %v419_v45, %v414_v48  ;;  %v3757_v50 = vpop.f32.mrb[8].mxu1  ;;  %v5929_v51 = vpack.i.bf16 %v419_v45, %v414_v48 }
  0xf0   :  { %v429_v52 = vadd.f32 %v3757_v50, %v5897_v22  ;;  %v423_v53 = vpop.f32.mrb[9].mxu1 }
  0xf1   :  { %v424_v54 = vadd.f32 %v5897_v22, %v423_v53 }
  0xf3   :  { %v4467_v55 = vpack.c.bf16 %v429_v52, %v424_v54  ;;  %v3760_v56 = vpop.f32.mrb[10].mxu1  ;;  %v5933_v57 = vpack.i.bf16 %v429_v52, %v424_v54 }
  0xf4   :  { %v439_v58 = vadd.f32 %v3760_v56, %v5897_v22  ;;  %v433_v59 = vpop.f32.mrb[11].mxu1 }
  0xf5   :  { %v434_v60 = vadd.f32 %v5897_v22, %v433_v59  ;;  %4461 = vmatpush3.bf16.xpose.msk.msra.mxu1 %vm5903_vm3, %v4459_v42 }
  0xf6   :  { %4462 = vmatprep.subr.bf16.mxu1 %v5495_v46 }
  0xf7   :  { %v4471_v61 = vpack.c.bf16 %v439_v58, %v434_v60  ;;  %v3763_v62 = vpop.f32.mrb[12].mxu1  ;;  %v5940_v63 = vpack.i.bf16 %v439_v58, %v434_v60 }
  0xf8   :  { %v449_v0 = vadd.f32 %v3763_v62, %v5897_v22  ;;  %v443_v1 = vpop.f32.mrb[13].mxu1 }
  0xf9   :  { %v444_v2 = vadd.f32 %v5897_v22, %v443_v1 }
  0xfb   :  { %v4475_v3 = vpack.c.bf16 %v449_v0, %v444_v2  ;;  %v3766_v4 = vpop.f32.mrb[14].mxu1  ;;  %v5944_v5 = vpack.i.bf16 %v449_v0, %v444_v2 }
  0xfc   :  { %v5947_v7 = vadd.f32 %v3766_v4, %v5897_v22  ;;  %v453_v8 = vpop.f32.mrb[15].mxu1  ;;  %v3152_v4 = vld [vmem:[%s6723_s5] ss:$0 sm:$0xff] }
  0xfd   :  { %v5950_v9 = vadd.f32 %v5897_v22, %v453_v8  ;;  %4465 = vmatpush3.bf16.xpose.msk.msra.mxu1 %vm5903_vm3, %v4463_v49 }
  0xfe   :  { %4466 = vmatprep.subr.bf16.mxu1 %v5495_v46 }
  0xff   :  { %v4479_v10 = vpack.c.bf16 %v5947_v7, %v5950_v9  ;;  %v3769_v11 = vpop.f32.mrb[16].mxu1  ;;  %v5959_v12 = vpack.i.bf16 %v5947_v7, %v5950_v9 }
 0x100   :  { %v469_v13 = vadd.f32 %v3769_v11, %v5897_v22  ;;  %v463_v14 = vpop.f32.mrb[17].mxu1  ;;  %v6025_v11 = vadd.f32 %v3152_v4, %v5920_v41  ;;  %v6053_v41 = vld [vmem:[%s6727_s9] ss:$0 sm:$0xff] }
 0x101   :  { %v464_v15 = vadd.f32 %v5897_v22, %v463_v14 }
 0x103   :  { %v4483_v16 = vpack.c.bf16 %v469_v13, %v464_v15  ;;  %v5963_v17 = vpack.i.bf16 %v469_v13, %v464_v15  ;;  %v3772_v18 = vpop.f32.mrb[18].mxu1 }
 0x104   :  { %v479_v19 = vadd.f32 %v3772_v18, %v5897_v22  ;;  %v473_v20 = vpop.f32.mrb[19].mxu1 }
 0x105   :  { %4933 = vrot.lane.b32.xlu1 %v5963_v17, %s5498_s2  ;;  %4469 = vmatpush3.bf16.xpose.msk.msra.mxu1 %vm5903_vm3, %v4467_v55  ;;  %v474_v21 = vadd.f32 %v5897_v22, %v473_v20 }
 0x106   :  { %4485 = vmatpush3.bf16.xpose.msk.msra.mxu0 %vm5903_vm3, %v4483_v16  ;;  %4470 = vmatprep.subr.bf16.mxu1 %v5495_v46 }
 0x107   :  { %v4487_v23 = vpack.c.bf16 %v479_v19, %v474_v21  ;;  %4486 = vmatprep.subr.bf16.mxu0 %v5495_v46  ;;  %v3775_v24 = vpop.f32.mrb[20].mxu1  ;;  %v5975_v25 = vpack.i.bf16 %v479_v19, %v474_v21 }
 0x108   :  { %v489_v26 = vadd.f32 %v3775_v24, %v5897_v22  ;;  %v483_v28 = vpop.f32.mrb[21].mxu1 }
 0x109   :  { %4938 = vrot.lane.b32.xlu1 %v5914_v36, %s5498_s2  ;;  %v484_v29 = vadd.f32 %v5897_v22, %v483_v28 }
 0x10b   :  { %v4491_v31 = vpack.c.bf16 %v489_v26, %v484_v29  ;;  %v3778_v32 = vpop.f32.mrb[22].mxu1  ;;  %v5981_v33 = vpack.i.bf16 %v489_v26, %v484_v29 }
 0x10c   :  { %v499_v34 = vadd.f32 %v3778_v32, %v5897_v22  ;;  %v493_v35 = vpop.f32.mrb[23].mxu1 }
 0x10d   :  { %4473 = vmatpush3.bf16.xpose.msk.msra.mxu1 %vm5903_vm3, %v4471_v61  ;;  %v494_v37 = vadd.f32 %v5897_v22, %v493_v35 }
 0x10e   :  { %4489 = vmatpush3.bf16.xpose.msk.msra.mxu0 %vm5903_vm3, %v4487_v23  ;;  %4474 = vmatprep.subr.bf16.mxu1 %v5495_v46 }
 0x10f   :  { %4490 = vmatprep.subr.bf16.mxu0 %v5495_v46  ;;  %v4495_v38 = vpack.c.bf16 %v499_v34, %v494_v37  ;;  %v3781_v40 = vpop.f32.mrb[24].mxu1  ;;  %v5991_v42 = vpack.i.bf16 %v499_v34, %v494_v37 }
 0x110   :  { %v509_v43 = vadd.f32 %v3781_v40, %v5897_v22  ;;  %v503_v45 = vpop.f32.mrb[25].mxu1 }
 0x111   :  { %v504_v47 = vadd.f32 %v5897_v22, %v503_v45 }
 0x113   :  { %v4499_v48 = vpack.c.bf16 %v509_v43, %v504_v47  ;;  %v3784_v49 = vpop.f32.mrb[26].mxu1  ;;  %v5995_v50 = vpack.i.bf16 %v509_v43, %v504_v47 }
 0x114   :  { %v519_v52 = vadd.f32 %v3784_v49, %v5897_v22  ;;  %v513_v53 = vpop.f32.mrb[27].mxu1 }
 0x115   :  { %4477 = vmatpush3.bf16.xpose.msk.msra.mxu1 %vm5903_vm3, %v4475_v3  ;;  %v514_v54 = vadd.f32 %v5897_v22, %v513_v53 }
 0x116   :  { %4493 = vmatpush3.bf16.xpose.msk.msra.mxu0 %vm5903_vm3, %v4491_v31  ;;  %4478 = vmatprep.subr.bf16.mxu1 %v5495_v46 }
 0x117   :  { %4494 = vmatprep.subr.bf16.mxu0 %v5495_v46  ;;  %v4503_v55 = vpack.c.bf16 %v519_v52, %v514_v54  ;;  %v3787_v56 = vpop.f32.mrb[28].mxu1  ;;  %v6005_v58 = vpack.i.bf16 %v519_v52, %v514_v54 }
 0x118   :  { %v529_v59 = vadd.f32 %v3787_v56, %v5897_v22  ;;  %v523_v60 = vpop.f32.mrb[29].mxu1 }
 0x119   :  { %v524_v61 = vadd.f32 %v5897_v22, %v523_v60 }
 0x11b   :  { %v4507_v62 = vpack.c.bf16 %v529_v59, %v524_v61  ;;  %v3790_v0 = vpop.f32.mrb[30].mxu1  ;;  %v6009_v1 = vpack.i.bf16 %v529_v59, %v524_v61 }
 0x11c   :  { %v539_v2 = vadd.f32 %v3790_v0, %v5897_v22  ;;  %v533_v3 = vpop.f32.mrb[31].mxu1 }
 0x11d   :  { %4481 = vmatpush3.bf16.xpose.msk.msra.mxu1 %vm5903_vm3, %v4479_v10  ;;  %v534_v7 = vadd.f32 %v5897_v22, %v533_v3  ;;  %v6044_v22 = vadd.f32 %v5917_v39, %v3152_v4  ;;  %v3801_v10 = vpop.f32.mrb[2].mxu0 }
 0x11e   :  { %4497 = vmatpush3.bf16.xpose.msk.msra.mxu0 %vm5903_vm3, %v4495_v38  ;;  %4514 = vmatprep.subr.bf16.mxu1 %v5495_v46  ;;  %v721_v13 = vadd.f32 %v3801_v10, %v6053_v41  ;;  %v715_v14 = vpop.f32.mrb[3].mxu0 }
 0x11f   :  { %4498 = vmatprep.subr.bf16.mxu0 %v5495_v46  ;;  %v4511_v8 = vpack.c.bf16 %v539_v2, %v534_v7  ;;  %v6022_v9 = vpack.i.bf16 %v539_v2, %v534_v7  ;;  %v716_v15 = vadd.f32 %v6053_v41, %v715_v14  ;;  %v3804_v39 = vpop.f32.mrb[4].mxu0 }
 0x120   :  { %v731_v18 = vadd.f32 %v3804_v39, %v6053_v41  ;;  %v725_v19 = vpop.f32.mrb[5].mxu0 }
 0x121   :  { %v4515_v16 = vpack.c.bf16 %v721_v13, %v716_v15  ;;  %v6058_v20 = vpack.i.bf16 %v721_v13, %v716_v15  ;;  %v726_v21 = vadd.f32 %v6053_v41, %v725_v19  ;;  %v3807_v23 = vpop.f32.mrb[6].mxu0 }
 0x122   :  { %v741_v26 = vadd.f32 %v3807_v23, %v6053_v41  ;;  %v735_v28 = vpop.f32.mrb[7].mxu0 }
 0x123   :  { %v4518_v24 = vpack.c.bf16 %v731_v18, %v726_v21  ;;  %v6063_v29 = vpack.i.bf16 %v731_v18, %v726_v21  ;;  %v736_v31 = vadd.f32 %v6053_v41, %v735_v28  ;;  %v3810_v32 = vpop.f32.mrb[8].mxu0 }
 0x124   :  { %3880 = vmatmul.mubr.msk.f32.vlgmr.msra.gmra.mrb[32].mxu1 %vm888_vm2, %v6025_v11  ;;  %v751_v35 = vadd.f32 %v3810_v32, %v6053_v41  ;;  %v745_v37 = vpop.f32.mrb[9].mxu0 }
 0x125   :  { %3949 = vmatprep.mubr.msk.f32.mxu1 %vm5496_vm1, %v5497_v6  ;;  %4516 = vmatpush3.bf16.msra.mxu1 %v4515_v16  ;;  %v4521_v34 = vpack.c.bf16 %v741_v26, %v736_v31  ;;  %v6068_v38 = vpack.i.bf16 %v741_v26, %v736_v31  ;;  %v746_v40 = vadd.f32 %v6053_v41, %v745_v37  ;;  %v3813_v43 = vpop.f32.mrb[10].mxu0 }
 0x126   :  { %4501 = vmatpush3.bf16.xpose.msk.msra.mxu0 %vm5903_vm3, %v4499_v48  ;;  %4517 = vmatprep.subr.bf16.mxu1 %v5495_v46  ;;  %v761_v47 = vadd.f32 %v3813_v43, %v6053_v41  ;;  %v755_v48 = vpop.f32.mrb[11].mxu0 }
 0x127   :  { %4502 = vmatprep.subr.bf16.mxu0 %v5495_v46  ;;  %v4524_v45 = vpack.c.bf16 %v751_v35, %v746_v40  ;;  %v6073_v49 = vpack.i.bf16 %v751_v35, %v746_v40  ;;  %v756_v52 = vadd.f32 %v6053_v41, %v755_v48  ;;  %v3816_v53 = vpop.f32.mrb[12].mxu0 }
 0x128   :  { %v765_v56 = vpop.f32.mrb[13].mxu0 }
 0x129   :  { %4519 = vmatpush3.bf16.msra.mxu1 %v4518_v24  ;;  %v4527_v54 = vpack.c.bf16 %v761_v47, %v756_v52  ;;  %v6078_v59 = vpack.i.bf16 %v761_v47, %v756_v52  ;;  %v766_v60 = vadd.f32 %v6053_v41, %v765_v56  ;;  %v3819_v61 = vpop.f32.mrb[14].mxu0 }
 0x12a   :  { %4520 = vmatprep.subr.bf16.mxu1 %v5495_v46  ;;  %v781_v0 = vadd.f32 %v3819_v61, %v6053_v41  ;;  %v775_v2 = vpop.f32.mrb[15].mxu0 }
 0x12b   :  { %v776_v4 = vadd.f32 %v6053_v41, %v775_v2  ;;  %v3822_v7 = vpop.f32.mrb[16].mxu0 }
 0x12c   :  { %v791_v10 = vadd.f32 %v3822_v7, %v6053_v41  ;;  %v785_v13 = vpop.f32.mrb[17].mxu0 }
 0x12d   :  { %4522 = vmatpush3.bf16.msra.mxu1 %v4521_v34  ;;  %v6088_v14 = vpack.i.bf16 %v781_v0, %v776_v4  ;;  %v786_v15 = vadd.f32 %v6053_v41, %v785_v13  ;;  %v3825_v16 = vpop.f32.mrb[18].mxu0 }
 0x12e   :  { %4505 = vmatpush3.bf16.xpose.msk.msra.mxu0 %vm5903_vm3, %v4503_v55  ;;  %4523 = vmatprep.subr.bf16.mxu1 %v5495_v46  ;;  %v771_v55 = vadd.f32 %v3816_v53, %v6053_v41  ;;  %v801_v18 = vadd.f32 %v3825_v16, %v6053_v41  ;;  %v795_v19 = vpop.f32.mrb[19].mxu0 }
 0x12f   :  { %4506 = vmatprep.subr.bf16.mxu0 %v5495_v46  ;;  %v4536_v39 = vpack.c.bf16 %v791_v10, %v786_v15  ;;  %v6093_v21 = vpack.i.bf16 %v791_v10, %v786_v15  ;;  %v796_v23 = vadd.f32 %v6053_v41, %v795_v19  ;;  %v3828_v24 = vpop.f32.mrb[20].mxu0 }
 0x130   :  { %v6083_v3 = vpack.i.bf16 %v771_v55, %v766_v60  ;;  %v811_v28 = vadd.f32 %v3828_v24, %v6053_v41  ;;  %v805_v31 = vpop.f32.mrb[21].mxu0 }
 0x131   :  { %4525 = vmatpush3.bf16.msra.mxu1 %v4524_v45  ;;  %v4539_v26 = vpack.c.bf16 %v801_v18, %v796_v23  ;;  %v6098_v32 = vpack.i.bf16 %v801_v18, %v796_v23  ;;  %v806_v34 = vadd.f32 %v6053_v41, %v805_v31  ;;  %v3831_v35 = vpop.f32.mrb[22].mxu0 }
 0x132   :  { %4526 = vmatprep.subr.bf16.mxu1 %v5495_v46  ;;  %v821_v40 = vadd.f32 %v3831_v35, %v6053_v41  ;;  %v815_v43 = vpop.f32.mrb[23].mxu0 }
 0x133   :  { %v4542_v37 = vpack.c.bf16 %v811_v28, %v806_v34  ;;  %v6103_v45 = vpack.i.bf16 %v811_v28, %v806_v34  ;;  %v816_v47 = vadd.f32 %v6053_v41, %v815_v43  ;;  %v3834_v48 = vpop.f32.mrb[24].mxu0 }
 0x134   :  { %v831_v53 = vadd.f32 %v3834_v48, %v6053_v41  ;;  %v6138_v48 = vld [vmem:[%s6721_s3] ss:$0 sm:$0xff] }
 0x135   :  { %4528 = vmatpush3.bf16.msra.mxu1 %v4527_v54  ;;  %v4545_v52 = vpack.c.bf16 %v821_v40, %v816_v47  ;;  %v825_v54 = vpop.f32.mrb[25].mxu0 }
 0x136   :  { %4509 = vmatpush3.bf16.xpose.msk.msra.mxu0 %vm5903_vm3, %v4507_v62  ;;  %4529 = vmatprep.subr.bf16.mxu1 %v5495_v46  ;;  %v4530_v62 = vpack.c.bf16 %v771_v55, %v766_v60  ;;  %v6108_v55 = vpack.i.bf16 %v821_v40, %v816_v47  ;;  %v826_v56 = vadd.f32 %v6053_v41, %v825_v54  ;;  %v3837_v60 = vpop.f32.mrb[26].mxu0 }
 0x137   :  { %4510 = vmatprep.subr.bf16.mxu0 %v5495_v46 }
 0x138   :  { %v4548_v61 = vpack.c.bf16 %v831_v53, %v826_v56  ;;  %v6113_v2 = vpack.i.bf16 %v831_v53, %v826_v56 }
 0x139   :  { %4531 = vmatpush3.bf16.msra.mxu1 %v4530_v62  ;;  %v841_v62 = vadd.f32 %v3837_v60, %v6053_v41 }
 0x13a   :  { %4532 = vmatprep.subr.bf16.mxu1 %v5495_v46 }
 0x13e   :  { %4513 = vmatpush3.bf16.xpose.msk.msra.mxu0 %vm5903_vm3, %v4511_v8  ;;  %v4533_v8 = vpack.c.bf16 %v781_v0, %v776_v4  ;;  %v835_v0 = vpop.f32.mrb[27].mxu0 }
 0x13f   :  { %4538 = vmatprep.subr.bf16.mxu0 %v5495_v46  ;;  %v836_v4 = vadd.f32 %v6053_v41, %v835_v0  ;;  %v3840_v7 = vpop.f32.mrb[28].mxu0 }
 0x140   :  { %4534 = vmatpush3.bf16.msra.mxu1 %v4533_v8  ;;  %v851_v10 = vadd.f32 %v3840_v7, %v6053_v41  ;;  %v845_v13 = vpop.f32.mrb[29].mxu0 }
 0x141   :  { %4535 = vmatprep.subr.bf16.mxu1 %v5495_v46  ;;  %v4551_v8 = vpack.c.bf16 %v841_v62, %v836_v4  ;;  %v6118_v15 = vpack.i.bf16 %v841_v62, %v836_v4  ;;  %v846_v16 = vadd.f32 %v6053_v41, %v845_v13 }
 0x143   :  { %v4554_v18 = vpack.c.bf16 %v851_v10, %v846_v16  ;;  %v6123_v24 = vpack.i.bf16 %v851_v10, %v846_v16 }
 0x144   :  { %4537 = vmatpush3.bf16.msra.mxu1 %v4536_v39  ;;  %v3843_v39 = vpop.f32.mrb[30].mxu0 }
 0x145   :  { %3915 = vmatmul.mubr.msk.f32.vlgmr.msra.gmra.mrb[34].mxu0 %vm888_vm2, %v6044_v22  ;;  %4562 = vmatprep.subr.bf16.mxu1 %v5495_v46  ;;  %v861_v19 = vadd.f32 %v3843_v39, %v6053_v41  ;;  %v855_v23 = vpop.f32.mrb[31].mxu0 }
 0x146   :  { %3984 = vmatprep.mubr.msk.f32.mxu0 %vm5496_vm1, %v5497_v6  ;;  %4540 = vmatpush3.bf16.msra.mxu0 %v4539_v26  ;;  %v856_v26 = vadd.f32 %v6053_v41, %v855_v23  ;;  %v3846_v28 = vpop.f32.mrb[32].mxu0 }
 0x147   :  { %4541 = vmatprep.subr.bf16.mxu0 %v5495_v46  ;;  %v871_v34 = vadd.f32 %v3846_v28, %v6053_v41  ;;  %v865_v35 = vpop.f32.mrb[33].mxu0 }
 0x148   :  { %v4557_v31 = vpack.c.bf16 %v861_v19, %v856_v26  ;;  %v866_v40 = vadd.f32 %v6053_v41, %v865_v35  ;;  %v6144_v41 = vld [vmem:[%s6721_s3 + $0x1] ss:$0 sm:$0xff] }
 0x14a   :  { %4543 = vmatpush3.bf16.msra.mxu0 %v4542_v37  ;;  %v6128_v37 = vpack.i.bf16 %v861_v19, %v856_v26  ;;  %v4560_v43 = vpack.c.bf16 %v871_v34, %v866_v40  ;;  %v6132_v47 = vpack.i.bf16 %v871_v34, %v866_v40 }
 0x14b   :  { %4544 = vmatprep.subr.bf16.mxu0 %v5495_v46 }
 0x14e   :  { %4546 = vmatpush3.bf16.msra.mxu0 %v4545_v52 }
 0x14f   :  { %4547 = vmatprep.subr.bf16.mxu0 %v5495_v46 }
 0x152   :  { %4549 = vmatpush3.bf16.msra.mxu0 %v4548_v61 }
 0x153   :  { %4550 = vmatprep.subr.bf16.mxu0 %v5495_v46 }
 0x156   :  { %4552 = vmatpush3.bf16.msra.mxu0 %v4551_v8 }
 0x157   :  { %4553 = vmatprep.subr.bf16.mxu0 %v5495_v46 }
 0x15a   :  { %4555 = vmatpush3.bf16.msra.mxu0 %v4554_v18 }
 0x15b   :  { %4556 = vmatprep.subr.bf16.mxu0 %v5495_v46 }
 0x15e   :  { %4558 = vmatpush3.bf16.msra.mxu0 %v4557_v31 }
 0x15f   :  { %4559 = vmatprep.subr.bf16.mxu0 %v5495_v46 }
 0x162   :  { %4561 = vmatpush3.bf16.msra.mxu0 %v4560_v43 }
 0x163   :  { %4594 = vmatprep.subr.bf16.mxu0 %v5495_v46 }
 0x177   :  { %v4934_v39 = vpop.permute.xlu1 %4933 }
 0x17b   :  { %v4939_v18 = vpop.permute.xlu1 %4938 }
 0x17c   :  { %v4941_v40 = vunpack.i.h.bf16 %v4939_v18  ;;  %v4940_v43 = vunpack.i.l.bf16 %v4939_v18  ;;  %v4936_v18 = vunpack.i.h.bf16 %v4934_v39 }
 0x1f7   :  { %v1006_v52 = vpop.f32.mrb[32].mxu1 }
 0x1f8   :  { %v1007_v53 = vadd.f32 %v6138_v48, %v1006_v52  ;;  %v3881_v54 = vpop.f32.mrb[33].mxu1  ;;  %v4567_v52 = vpack.c.bf16 %v4941_v40, %v4940_v43 }
 0x1fa   :  { %1131 = vmax.xlane.f32.xlu0 %v1007_v53 }
 0x218   :  { %v1127_v56 = vpop.f32.mrb[34].mxu0 }
 0x219   :  { %v1128_v60 = vadd.f32 %v6144_v41, %v1127_v56  ;;  %v3916_v61 = vpop.f32.mrb[35].mxu0 }
 0x21b   :  { %1133 = vmax.xlane.f32.xlu0 %v1128_v60 }
 0x231   :  { %4928 = vrot.lane.b32.xlu0 %v5907_v30, %s5498_s2 }
 0x235   :  { %4948 = vrot.lane.b32.xlu0 %v5922_v44, %s5498_s2 }
 0x239   :  { %4958 = vrot.lane.b32.xlu0 %v5929_v51, %s5498_s2 }
 0x23d   :  { %4968 = vrot.lane.b32.xlu0 %v5933_v57, %s5498_s2 }
 0x241   :  { %4978 = vrot.lane.b32.xlu0 %v5940_v63, %s5498_s2 }
 0x245   :  { %4988 = vrot.lane.b32.xlu0 %v5944_v5, %s5498_s2 }
 0x249   :  { %4998 = vrot.lane.b32.xlu0 %v5959_v12, %s5498_s2 }
 0x24d   :  { %1293 = vrot.lane.b32.xlu0 %v6025_v11, %s5498_s2 }
 0x287   :  { %v1132_v62 = vpop.xlane.xlu0 %1131 }
 0x288   :  { %v1135_v0 = vsub.f32 %v1007_v53, %v1132_v62 }
 0x28a   :  { %v1137_v4 = vmul.f32 1.442695, %v1135_v0 }
 0x28c   :  { %5407 = vpow2.f32 %v1137_v4 }
 0x296   :  { %v5408_v7 = vpop.eup %5407 }
 0x297   :  { %1141 = vadd.xlane.f32.xlu1 %v5408_v7 }
 0x2a8   :  { %v1134_v8 = vpop.xlane.xlu0 %1133 }
 0x2a9   :  { %v1136_v10 = vsub.f32 %v1128_v60, %v1134_v8 }
 0x2ab   :  { %v1139_v13 = vmul.f32 1.442695, %v1136_v10 }
 0x2ac   :  { %v4929_v23 = vpop.permute.xlu0 %4928 }
 0x2ad   :  { %5409 = vpow2.f32 %v1139_v13  ;;  %v4931_v26 = vunpack.i.h.bf16 %v4929_v23  ;;  %v4930_v28 = vunpack.i.l.bf16 %v4929_v23 }
 0x2af   :  { %v4563_v35 = vpack.c.bf16 %v4931_v26, %v4930_v28 }
 0x2b0   :  { %v4949_v53 = vpop.permute.xlu0 %4948 }
 0x2b1   :  { %v4951_v54 = vunpack.i.h.bf16 %v4949_v53  ;;  %v4950_v56 = vunpack.i.l.bf16 %v4949_v53 }
 0x2b3   :  { %v4571_v60 = vpack.c.bf16 %v4951_v54, %v4950_v56 }
 0x2b4   :  { %v4959_v61 = vpop.permute.xlu0 %4958 }
 0x2b5   :  { %v4961_v62 = vunpack.i.h.bf16 %v4959_v61  ;;  %v4960_v0 = vunpack.i.l.bf16 %v4959_v61 }
 0x2b7   :  { %v5410_v16 = vpop.eup %5409 }
 0x2b8   :  { %1143 = vadd.xlane.f32.xlu1 %v5410_v16  ;;  %v4969_v8 = vpop.permute.xlu0 %4968 }
 0x2b9   :  { %v4971_v10 = vunpack.i.h.bf16 %v4969_v8  ;;  %v4970_v13 = vunpack.i.l.bf16 %v4969_v8 }
 0x2bb   :  { %v4579_v26 = vpack.c.bf16 %v4971_v10, %v4970_v13 }
 0x2c9   :  { %4943 = vrot.lane.b32.xlu1 %v5975_v25, %s5498_s2 }
 0x2cd   :  { %4953 = vrot.lane.b32.xlu1 %v5981_v33, %s5498_s2 }
 0x2d1   :  { %4963 = vrot.lane.b32.xlu1 %v5991_v42, %s5498_s2 }
 0x2d5   :  { %4973 = vrot.lane.b32.xlu1 %v5995_v50, %s5498_s2 }
 0x2d9   :  { %4983 = vrot.lane.b32.xlu1 %v6005_v58, %s5498_s2 }
 0x2dd   :  { %4993 = vrot.lane.b32.xlu1 %v6009_v1, %s5498_s2 }
 0x2e1   :  { %5003 = vrot.lane.b32.xlu1 %v6022_v9, %s5498_s2 }
 0x2e5   :  { %1431 = vrot.lane.b32.xlu1 %v6044_v22, %s5498_s2 }
 0x324   :  { %v1142_v19 = vpop.xlane.xlu1 %1141 }
 0x325   :  { %5411 = vrcp.f32 %v1142_v19  ;;  %v4935_v19 = vunpack.i.l.bf16 %v4934_v39 }
 0x32f   :  { %v5412_v31 = vpop.eup %5411 }
 0x330   :  { %v6179_v34 = vmul.f32 %v5412_v31, %v5408_v7  ;;  %v4575_v7 = vpack.c.bf16 %v4961_v62, %v4960_v0  ;;  %v4595_v31 = vpack.c.bf16 %v4936_v18, %v4935_v19 }
 0x332   :  { %3950 = vmatmul.mubr.f32.vlgmr.msra.gmra.mrb[34].mxu1 %v6179_v34 }
 0x333   :  { %4565 = vmatpush3.bf16.xpose.msk.msra.mxu1 %vm5903_vm3, %v4563_v35  ;;  %4019 = vmatprep.mubr.msk.f32.mxu1 %vm5496_vm1, %v5497_v6  ;;  %v4979_v35 = vpop.permute.xlu0 %4978 }
 0x334   :  { %4566 = vmatprep.subr.bf16.mxu1 %v5495_v46  ;;  %v4981_v43 = vunpack.i.h.bf16 %v4979_v35 }
 0x337   :  { %v4989_v54 = vpop.permute.xlu0 %4988 }
 0x338   :  { %v4991_v61 = vunpack.i.h.bf16 %v4989_v54  ;;  %v4990_v62 = vunpack.i.l.bf16 %v4989_v54 }
 0x33b   :  { %4569 = vmatpush3.bf16.xpose.msk.msra.mxu1 %vm5903_vm3, %v4567_v52  ;;  %v4980_v52 = vunpack.i.l.bf16 %v4979_v35  ;;  %v4999_v8 = vpop.permute.xlu0 %4998 }
 0x33c   :  { %4570 = vmatprep.subr.bf16.mxu1 %v5495_v46  ;;  %v5001_v18 = vunpack.i.h.bf16 %v4999_v8  ;;  %v5000_v19 = vunpack.i.l.bf16 %v4999_v8 }
 0x33d   :  { %v4583_v53 = vpack.c.bf16 %v4981_v43, %v4980_v52 }
 0x343   :  { %4573 = vmatpush3.bf16.xpose.msk.msra.mxu1 %vm5903_vm3, %v4571_v60 }
 0x344   :  { %4574 = vmatprep.subr.bf16.mxu1 %v5495_v46 }
 0x345   :  { %v1144_v4 = vpop.xlane.xlu1 %1143 }
 0x346   :  { %5413 = vrcp.f32 %v1144_v4 }
 0x349   :  { %v4944_v40 = vpop.permute.xlu1 %4943 }
 0x34a   :  { %v4945_v39 = vunpack.i.l.bf16 %v4944_v40 }
 0x34b   :  { %4577 = vmatpush3.bf16.xpose.msk.msra.mxu1 %vm5903_vm3, %v4575_v7  ;;  %v4587_v7 = vpack.c.bf16 %v4991_v61, %v4990_v62 }
 0x34c   :  { %4578 = vmatprep.subr.bf16.mxu1 %v5495_v46 }
 0x34d   :  { %v4954_v60 = vpop.permute.xlu1 %4953 }
 0x34e   :  { %v4956_v0 = vunpack.i.h.bf16 %v4954_v60  ;;  %v4955_v4 = vunpack.i.l.bf16 %v4954_v60 }
 0x350   :  { %v5414_v23 = vpop.eup %5413  ;;  %v4603_v10 = vpack.c.bf16 %v4956_v0, %v4955_v4 }
 0x351   :  { %v6196_v28 = vmul.f32 %v5414_v23, %v5410_v16  ;;  %v4946_v16 = vunpack.i.h.bf16 %v4944_v40  ;;  %v4964_v13 = vpop.permute.xlu1 %4963 }
 0x352   :  { %v4966_v23 = vunpack.i.h.bf16 %v4964_v13 }
 0x353   :  { %3985 = vmatmul.mubr.f32.vlgmr.msra.gmra.mrb[36].mxu0 %v6196_v28  ;;  %4581 = vmatpush3.bf16.xpose.msk.msra.mxu1 %vm5903_vm3, %v4579_v26  ;;  %v4599_v56 = vpack.c.bf16 %v4946_v16, %v4945_v39  ;;  %v4965_v26 = vunpack.i.l.bf16 %v4964_v13  ;;  %v1294_v16 = vpop.permute.xlu0 %1293 }
 0x354   :  { %4597 = vmatpush3.bf16.xpose.msk.msra.mxu0 %vm5903_vm3, %v4595_v31  ;;  %4582 = vmatprep.subr.bf16.mxu1 %v5495_v46  ;;  %v4591_v31 = vpack.c.bf16 %v5001_v18, %v5000_v19 }
 0x355   :  { %4598 = vmatprep.subr.bf16.mxu0 %v5495_v46  ;;  %4054 = vmatprep.mubr.msk.f32.mxu0 %vm5496_vm1, %v5497_v6  ;;  %v4607_v35 = vpack.c.bf16 %v4966_v23, %v4965_v26  ;;  %v4974_v40 = vpop.permute.xlu1 %4973 }
 0x356   :  { %v4976_v43 = vunpack.i.h.bf16 %v4974_v40  ;;  %v4975_v52 = vunpack.i.l.bf16 %v4974_v40 }
 0x358   :  { %v4611_v39 = vpack.c.bf16 %v4976_v43, %v4975_v52 }
 0x35b   :  { %4585 = vmatpush3.bf16.xpose.msk.msra.mxu1 %vm5903_vm3, %v4583_v53  ;;  %v4984_v53 = vpop.permute.xlu1 %4983 }
 0x35c   :  { %4601 = vmatpush3.bf16.xpose.msk.msra.mxu0 %vm5903_vm3, %v4599_v56  ;;  %4586 = vmatprep.subr.bf16.mxu1 %v5495_v46  ;;  %v4986_v54 = vunpack.i.h.bf16 %v4984_v53  ;;  %v4985_v56 = vunpack.i.l.bf16 %v4984_v53 }
 0x35d   :  { %4602 = vmatprep.subr.bf16.mxu0 %v5495_v46 }
 0x35e   :  { %v4615_v60 = vpack.c.bf16 %v4986_v54, %v4985_v56 }
 0x35f   :  { %v4994_v61 = vpop.permute.xlu1 %4993 }
 0x360   :  { %v4996_v62 = vunpack.i.h.bf16 %v4994_v61  ;;  %v4995_v0 = vunpack.i.l.bf16 %v4994_v61 }
 0x362   :  { %v4619_v4 = vpack.c.bf16 %v4996_v62, %v4995_v0 }
 0x363   :  { %4589 = vmatpush3.bf16.xpose.msk.msra.mxu1 %vm5903_vm3, %v4587_v7  ;;  %v5004_v7 = vpop.permute.xlu1 %5003 }
 0x364   :  { %4605 = vmatpush3.bf16.xpose.msk.msra.mxu0 %vm5903_vm3, %v4603_v10  ;;  %4590 = vmatprep.subr.bf16.mxu1 %v5495_v46  ;;  %v5006_v8 = vunpack.i.h.bf16 %v5004_v7  ;;  %v5005_v10 = vunpack.i.l.bf16 %v5004_v7 }
 0x365   :  { %4606 = vmatprep.subr.bf16.mxu0 %v5495_v46 }
 0x366   :  { %v4623_v13 = vpack.c.bf16 %v5006_v8, %v5005_v10 }
 0x367   :  { %v1432_v18 = vpop.permute.xlu1 %1431 }
 0x36b   :  { %4593 = vmatpush3.bf16.xpose.msk.msra.mxu1 %vm5903_vm3, %v4591_v31 }
 0x36c   :  { %4609 = vmatpush3.bf16.xpose.msk.msra.mxu0 %vm5903_vm3, %v4607_v35  ;;  %4626 = vmatprep.subr.bf16.mxu1 %v5495_v46 }
 0x36d   :  { %4610 = vmatprep.subr.bf16.mxu0 %v5495_v46 }
 0x372   :  { %4020 = vmatmul.mubr.msk.f32.vlgmr.msra.gmra.mrb[36].mxu1 %vm888_vm2, %v1294_v16 }
 0x373   :  { %4089 = vmatprep.mubr.msk.f32.mxu1 %vm5496_vm1, %v5497_v6 }
 0x374   :  { %4613 = vmatpush3.bf16.xpose.msk.msra.mxu0 %vm5903_vm3, %v4611_v39 }
 0x375   :  { %4614 = vmatprep.subr.bf16.mxu0 %v5495_v46 }
 0x37c   :  { %4617 = vmatpush3.bf16.xpose.msk.msra.mxu0 %vm5903_vm3, %v4615_v60 }
 0x37d   :  { %4618 = vmatprep.subr.bf16.mxu0 %v5495_v46 }
 0x384   :  { %4621 = vmatpush3.bf16.xpose.msk.msra.mxu0 %vm5903_vm3, %v4619_v4 }
 0x385   :  { %4622 = vmatprep.subr.bf16.mxu0 %v5495_v46 }
 0x38c   :  { %4625 = vmatpush3.bf16.xpose.msk.msra.mxu0 %vm5903_vm3, %v4623_v13 }
 0x38d   :  { %4650 = vmatprep.subr.bf16.mxu0 %v5495_v46 }
 0x393   :  { %4055 = vmatmul.mubr.msk.f32.vlgmr.msra.gmra.mrb[38].mxu0 %vm888_vm2, %v1432_v18 }
 0x394   :  { %4124 = vmatprep.mubr.msk.f32.mxu0 %vm5496_vm1, %v5497_v6 }
 0x405   :  { %v1217_v19 = vpop.f32.mrb[34].mxu1 }
 0x406   :  { %1291 = vst.msk [vmem:[#allocation2] sm:$0xff] %vm888_vm2, %v1217_v19  ;;  %v3951_v23 = vpop.f32.mrb[35].mxu1 }
 0x426   :  { %v1287_v26 = vpop.f32.mrb[36].mxu0 }
 0x427   :  { %1292 = vst.msk [vmem:[#allocation2 + $0x8] sm:$0xff] %vm888_vm2, %v1287_v26  ;;  %v3986_v31 = vpop.f32.mrb[37].mxu0 }
 0x445   :  { %v1427_v35 = vpop.f32.mrb[36].mxu1 }
 0x446   :  { %v1428_v40 = vadd.f32 %v6138_v48, %v1427_v35  ;;  %v4021_v43 = vpop.f32.mrb[37].mxu1 }
 0x448   :  { %1569 = vmax.xlane.f32.xlu0 %v1428_v40 }
 0x45e   :  { %5008 = vrot.lane.b32.xlu0 %v6058_v20, %s5498_s2 }
 0x462   :  { %5018 = vrot.lane.b32.xlu0 %v6063_v29, %s5498_s2 }
 0x466   :  { %v1565_v52 = vpop.f32.mrb[38].mxu0  ;;  %5028 = vrot.lane.b32.xlu0 %v6068_v38, %s5498_s2 }
 0x467   :  { %v1566_v16 = vadd.f32 %v6144_v41, %v1565_v52  ;;  %v4056_v39 = vpop.f32.mrb[39].mxu0 }
 0x469   :  { %1571 = vmax.xlane.f32.xlu1 %v1566_v16 }
 0x46a   :  { %5043 = vrot.lane.b32.xlu0 %v6113_v2, %s5498_s2 }
 0x46e   :  { %5053 = vrot.lane.b32.xlu0 %v6118_v15, %s5498_s2 }
 0x472   :  { %5058 = vrot.lane.b32.xlu0 %v6083_v3, %s5498_s2 }
 0x476   :  { %5068 = vrot.lane.b32.xlu0 %v6088_v14, %s5498_s2 }
 0x47a   :  { %5013 = vrot.lane.b32.xlu1 %v6098_v32, %s5498_s2  ;;  %5078 = vrot.lane.b32.xlu0 %v6093_v21, %s5498_s2 }
 0x47e   :  { %5023 = vrot.lane.b32.xlu1 %v6103_v45, %s5498_s2 }
 0x482   :  { %5033 = vrot.lane.b32.xlu1 %v6108_v55, %s5498_s2 }
 0x486   :  { %5038 = vrot.lane.b32.xlu1 %v6073_v49, %s5498_s2 }
 0x48a   :  { %5048 = vrot.lane.b32.xlu1 %v6078_v59, %s5498_s2 }
 0x48e   :  { %5063 = vrot.lane.b32.xlu1 %v6123_v24, %s5498_s2 }
 0x492   :  { %5073 = vrot.lane.b32.xlu1 %v6128_v37, %s5498_s2 }
 0x496   :  { %5083 = vrot.lane.b32.xlu1 %v6132_v47, %s5498_s2 }
 0x49a   :  { %5093 = vrot.lane.b32.xlu1 %v5963_v17, %s5499_s21 }
 0x4d5   :  { %v1570_v53 = vpop.xlane.xlu0 %1569 }
 0x4d6   :  { %v1573_v54 = vsub.f32 %v1428_v40, %v1570_v53 }
 0x4d8   :  { %v1575_v56 = vmul.f32 1.442695, %v1573_v54 }
 0x4d9   :  { %v5009_v60 = vpop.permute.xlu0 %5008 }
 0x4da   :  { %5415 = vpow2.f32 %v1575_v56  ;;  %v5011_v61 = vunpack.i.h.bf16 %v5009_v60  ;;  %v5010_v62 = vunpack.i.l.bf16 %v5009_v60 }
 0x4dc   :  { %v4627_v0 = vpack.c.bf16 %v5011_v61, %v5010_v62 }
 0x4dd   :  { %v5019_v4 = vpop.permute.xlu0 %5018 }
 0x4de   :  { %v5021_v7 = vunpack.i.h.bf16 %v5019_v4  ;;  %v5020_v8 = vunpack.i.l.bf16 %v5019_v4  ;;  %4628 = vmatpush3.bf16.msra.mxu1 %v4627_v0 }
 0x4df   :  { %4629 = vmatprep.subr.bf16.mxu1 %v5495_v46 }
 0x4e0   :  { %v4630_v10 = vpack.c.bf16 %v5021_v7, %v5020_v8 }
 0x4e1   :  { %v5029_v13 = vpop.permute.xlu0 %5028 }
 0x4e2   :  { %v5031_v18 = vunpack.i.h.bf16 %v5029_v13  ;;  %v5030_v19 = vunpack.i.l.bf16 %v5029_v13  ;;  %4631 = vmatpush3.bf16.msra.mxu1 %v4630_v10 }
 0x4e3   :  { %4632 = vmatprep.subr.bf16.mxu1 %v5495_v46 }
 0x4e4   :  { %v6283_v23 = vpop.eup %5415  ;;  %v4633_v26 = vpack.c.bf16 %v5031_v18, %v5030_v19 }
 0x4e5   :  { %1579 = vadd.xlane.f32.xlu0 %v6283_v23  ;;  %v5044_v43 = vpop.permute.xlu0 %5043 }
 0x4e6   :  { %4634 = vmatpush3.bf16.msra.mxu1 %v4633_v26  ;;  %v5046_v10 = vunpack.i.h.bf16 %v5044_v43  ;;  %v5045_v13 = vunpack.i.l.bf16 %v5044_v43 }
 0x4e7   :  { %4635 = vmatprep.subr.bf16.mxu1 %v5495_v46 }
 0x4e9   :  { %v5054_v62 = vpop.permute.xlu0 %5053 }
 0x4ed   :  { %v5059_v19 = vpop.permute.xlu0 %5058 }
 0x4f6   :  { %v1572_v31 = vpop.xlane.xlu1 %1571 }
 0x4f7   :  { %v1574_v35 = vsub.f32 %v1566_v16, %v1572_v31 }
 0x4f9   :  { %v1577_v40 = vmul.f32 1.442695, %v1574_v35 }
 0x4fa   :  { %v5014_v52 = vpop.permute.xlu1 %5013 }
 0x4fb   :  { %5417 = vpow2.f32 %v1577_v40  ;;  %v5016_v39 = vunpack.i.h.bf16 %v5014_v52  ;;  %v5015_v53 = vunpack.i.l.bf16 %v5014_v52  ;;  %5088 = vrot.lane.b32.xlu0 %v5907_v30, %s5499_s21  ;;  %v4660_v40 = vpack.c.bf16 %v5046_v10, %v5045_v13 }
 0x4fc   :  { %v5056_v52 = vunpack.i.h.bf16 %v5054_v62 }
 0x4fd   :  { %v4651_v54 = vpack.c.bf16 %v5016_v39, %v5015_v53  ;;  %v5055_v39 = vunpack.i.l.bf16 %v5054_v62 }
 0x4fe   :  { %v5024_v56 = vpop.permute.xlu1 %5023 }
 0x4ff   :  { %v5026_v60 = vunpack.i.h.bf16 %v5024_v56  ;;  %v5025_v61 = vunpack.i.l.bf16 %v5024_v56  ;;  %4652 = vmatpush3.bf16.msra.mxu0 %v4651_v54  ;;  %5098 = vrot.lane.b32.xlu0 %v5914_v36, %s5499_s21 }
 0x500   :  { %4653 = vmatprep.subr.bf16.mxu0 %v5495_v46 }
 0x501   :  { %v4654_v16 = vpack.c.bf16 %v5026_v60, %v5025_v61  ;;  %v5069_v60 = vpop.permute.xlu0 %5068  ;;  %v4663_v61 = vpack.c.bf16 %v5056_v52, %v5055_v39 }
 0x502   :  { %v5034_v0 = vpop.permute.xlu1 %5033 }
 0x503   :  { %v5036_v4 = vunpack.i.h.bf16 %v5034_v0  ;;  %v5035_v7 = vunpack.i.l.bf16 %v5034_v0  ;;  %4655 = vmatpush3.bf16.msra.mxu0 %v4654_v16  ;;  %5108 = vrot.lane.b32.xlu0 %v5922_v44, %s5499_s21  ;;  %v5061_v16 = vunpack.i.h.bf16 %v5059_v19  ;;  %v5060_v0 = vunpack.i.l.bf16 %v5059_v19 }
 0x504   :  { %4656 = vmatprep.subr.bf16.mxu0 %v5495_v46 }
 0x505   :  { %v6295_v8 = vpop.eup %5417  ;;  %v4657_v18 = vpack.c.bf16 %v5036_v4, %v5035_v7  ;;  %v4642_v13 = vpack.c.bf16 %v5061_v16, %v5060_v0  ;;  %v5079_v19 = vpop.permute.xlu0 %5078 }
 0x506   :  { %1581 = vadd.xlane.f32.xlu1 %v6295_v8  ;;  %v5039_v26 = vpop.permute.xlu1 %5038 }
 0x507   :  { %v5041_v31 = vunpack.i.h.bf16 %v5039_v26  ;;  %v5040_v35 = vunpack.i.l.bf16 %v5039_v26  ;;  %4658 = vmatpush3.bf16.msra.mxu0 %v4657_v18  ;;  %5118 = vrot.lane.b32.xlu0 %v5929_v51, %s5499_s21  ;;  %v5071_v18 = vunpack.i.h.bf16 %v5069_v60  ;;  %v5070_v26 = vunpack.i.l.bf16 %v5069_v60 }
 0x508   :  { %4659 = vmatprep.subr.bf16.mxu0 %v5495_v46 }
 0x509   :  { %v4636_v53 = vpack.c.bf16 %v5041_v31, %v5040_v35  ;;  %v4645_v39 = vpack.c.bf16 %v5071_v18, %v5070_v26 }
 0x50a   :  { %v5049_v54 = vpop.permute.xlu1 %5048 }
 0x50b   :  { %v5051_v56 = vunpack.i.h.bf16 %v5049_v54  ;;  %v5050_v43 = vunpack.i.l.bf16 %v5049_v54  ;;  %4637 = vmatpush3.bf16.msra.mxu1 %v4636_v53  ;;  %4661 = vmatpush3.bf16.msra.mxu0 %v4660_v40  ;;  %v5081_v53 = vunpack.i.h.bf16 %v5079_v19  ;;  %v5080_v54 = vunpack.i.l.bf16 %v5079_v19 }
 0x50c   :  { %5128 = vrot.lane.b32.xlu0 %v5933_v57, %s5499_s21  ;;  %4638 = vmatprep.subr.bf16.mxu1 %v5495_v46 }
 0x50d   :  { %v4639_v4 = vpack.c.bf16 %v5051_v56, %v5050_v43  ;;  %4662 = vmatprep.subr.bf16.mxu0 %v5495_v46  ;;  %v4648_v16 = vpack.c.bf16 %v5081_v53, %v5080_v54 }
 0x50e   :  { %v5064_v7 = vpop.permute.xlu1 %5063 }
 0x50f   :  { %v5066_v62 = vunpack.i.h.bf16 %v5064_v7  ;;  %v5065_v10 = vunpack.i.l.bf16 %v5064_v7  ;;  %4640 = vmatpush3.bf16.msra.mxu1 %v4639_v4  ;;  %4664 = vmatpush3.bf16.msra.mxu0 %v4663_v61 }
 0x510   :  { %5138 = vrot.lane.b32.xlu0 %v5940_v63, %s5499_s21  ;;  %4641 = vmatprep.subr.bf16.mxu1 %v5495_v46 }
 0x511   :  { %v4666_v31 = vpack.c.bf16 %v5066_v62, %v5065_v10  ;;  %4665 = vmatprep.subr.bf16.mxu0 %v5495_v46 }
 0x512   :  { %v5074_v35 = vpop.permute.xlu1 %5073 }
 0x513   :  { %v5076_v40 = vunpack.i.h.bf16 %v5074_v35  ;;  %v5075_v52 = vunpack.i.l.bf16 %v5074_v35  ;;  %4643 = vmatpush3.bf16.msra.mxu1 %v4642_v13  ;;  %4667 = vmatpush3.bf16.msra.mxu0 %v4666_v31 }
 0x514   :  { %5148 = vrot.lane.b32.xlu0 %v5944_v5, %s5499_s21  ;;  %4644 = vmatprep.subr.bf16.mxu1 %v5495_v46 }
 0x515   :  { %v4669_v56 = vpack.c.bf16 %v5076_v40, %v5075_v52  ;;  %4668 = vmatprep.subr.bf16.mxu0 %v5495_v46 }
 0x516   :  { %v5084_v43 = vpop.permute.xlu1 %5083 }
 0x517   :  { %v5086_v60 = vunpack.i.h.bf16 %v5084_v43  ;;  %v5085_v61 = vunpack.i.l.bf16 %v5084_v43  ;;  %5103 = vrot.lane.b32.xlu1 %v5975_v25, %s5499_s21  ;;  %4646 = vmatpush3.bf16.msra.mxu1 %v4645_v39 }
 0x518   :  { %4670 = vmatpush3.bf16.msra.mxu0 %v4669_v56  ;;  %5158 = vrot.lane.b32.xlu0 %v5959_v12, %s5499_s21 }
 0x519   :  { %v4672_v0 = vpack.c.bf16 %v5086_v60, %v5085_v61  ;;  %4647 = vmatprep.subr.bf16.mxu1 %v5495_v46  ;;  %4671 = vmatprep.subr.bf16.mxu0 %v5495_v46 }
 0x51a   :  { %v5094_v53 = vpop.permute.xlu1 %5093 }
 0x51b   :  { %5113 = vrot.lane.b32.xlu1 %v5981_v33, %s5499_s21  ;;  %4649 = vmatpush3.bf16.msra.mxu1 %v4648_v16 }
 0x51c   :  { %4673 = vmatpush3.bf16.msra.mxu0 %v4672_v0  ;;  %1872 = vrot.lane.b32.xlu0 %v6025_v11, %s5499_s21 }
 0x51d   :  { %4674 = vmatprep.subr.bf16.mxu1 %v5495_v46  ;;  %4706 = vmatprep.subr.bf16.mxu0 %v5495_v46 }
 0x51f   :  { %5123 = vrot.lane.b32.xlu1 %v5991_v42, %s5499_s21 }
 0x523   :  { %5133 = vrot.lane.b32.xlu1 %v5995_v50, %s5499_s21 }
 0x527   :  { %5143 = vrot.lane.b32.xlu1 %v6005_v58, %s5499_s21 }
 0x52b   :  { %5153 = vrot.lane.b32.xlu1 %v6009_v1, %s5499_s21 }
 0x52f   :  { %5163 = vrot.lane.b32.xlu1 %v6022_v9, %s5499_s21 }
 0x533   :  { %2010 = vrot.lane.b32.xlu1 %v6044_v22, %s5499_s21 }
 0x572   :  { %v1580_v4 = vpop.xlane.xlu0 %1579 }
 0x573   :  { %5419 = vrcp.f32 %v1580_v4 }
 0x576   :  { %v5089_v7 = vpop.permute.xlu0 %5088 }
 0x577   :  { %v5091_v62 = vunpack.i.h.bf16 %v5089_v7  ;;  %v5090_v10 = vunpack.i.l.bf16 %v5089_v7 }
 0x579   :  { %v4675_v26 = vpack.c.bf16 %v5091_v62, %v5090_v10  ;;  %v5096_v62 = vunpack.i.h.bf16 %v5094_v53  ;;  %v5095_v10 = vunpack.i.l.bf16 %v5094_v53 }
 0x57a   :  { %v5099_v31 = vpop.permute.xlu0 %5098 }
 0x57b   :  { %v5101_v19 = vunpack.i.h.bf16 %v5099_v31  ;;  %v5100_v35 = vunpack.i.l.bf16 %v5099_v31 }
 0x57d   :  { %v5420_v13 = vpop.eup %5419  ;;  %v4679_v40 = vpack.c.bf16 %v5101_v19, %v5100_v35  ;;  %v4707_v19 = vpack.c.bf16 %v5096_v62, %v5095_v10 }
 0x57e   :  { %v6338_v18 = vmul.f32 %v5420_v13, %v6283_v23  ;;  %v5109_v52 = vpop.permute.xlu0 %5108 }
 0x57f   :  { %v5111_v23 = vunpack.i.h.bf16 %v5109_v52  ;;  %v5110_v39 = vunpack.i.l.bf16 %v5109_v52 }
 0x580   :  { %4090 = vmatmul.mubr.f32.vlgmr.msra.gmra.mrb[38].mxu1 %v6338_v18 }
 0x581   :  { %4677 = vmatpush3.bf16.xpose.msk.msra.mxu1 %vm5903_vm3, %v4675_v26  ;;  %4159 = vmatprep.mubr.msk.f32.mxu1 %vm5496_vm1, %v5497_v6  ;;  %v4683_v54 = vpack.c.bf16 %v5111_v23, %v5110_v39 }
 0x582   :  { %4678 = vmatprep.subr.bf16.mxu1 %v5495_v46  ;;  %v5119_v56 = vpop.permute.xlu0 %5118 }
 0x583   :  { %v5121_v43 = vunpack.i.h.bf16 %v5119_v56  ;;  %v5120_v60 = vunpack.i.l.bf16 %v5119_v56 }
 0x585   :  { %v4687_v16 = vpack.c.bf16 %v5121_v43, %v5120_v60 }
 0x586   :  { %v5129_v0 = vpop.permute.xlu0 %5128 }
 0x587   :  { %v5131_v4 = vunpack.i.h.bf16 %v5129_v0  ;;  %v5130_v7 = vunpack.i.l.bf16 %v5129_v0 }
 0x589   :  { %4681 = vmatpush3.bf16.xpose.msk.msra.mxu1 %vm5903_vm3, %v4679_v40  ;;  %v4691_v26 = vpack.c.bf16 %v5131_v4, %v5130_v7 }
 0x58a   :  { %4682 = vmatprep.subr.bf16.mxu1 %v5495_v46  ;;  %v5139_v35 = vpop.permute.xlu0 %5138 }
 0x58b   :  { %v5141_v52 = vunpack.i.h.bf16 %v5139_v35  ;;  %v5140_v23 = vunpack.i.l.bf16 %v5139_v35 }
 0x58d   :  { %v4695_v53 = vpack.c.bf16 %v5141_v52, %v5140_v23 }
 0x591   :  { %4685 = vmatpush3.bf16.xpose.msk.msra.mxu1 %vm5903_vm3, %v4683_v54  ;;  %v5149_v54 = vpop.permute.xlu0 %5148 }
 0x592   :  { %4686 = vmatprep.subr.bf16.mxu1 %v5495_v46  ;;  %v5151_v60 = vunpack.i.h.bf16 %v5149_v54 }
 0x593   :  { %v1582_v61 = vpop.xlane.xlu1 %1581 }
 0x594   :  { %5421 = vrcp.f32 %v1582_v61  ;;  %v5150_v61 = vunpack.i.l.bf16 %v5149_v54 }
 0x595   :  { %v5159_v7 = vpop.permute.xlu0 %5158 }
 0x596   :  { %v4699_v4 = vpack.c.bf16 %v5151_v60, %v5150_v61 }
 0x597   :  { %v5104_v40 = vpop.permute.xlu1 %5103 }
 0x598   :  { %v5105_v39 = vunpack.i.l.bf16 %v5104_v40 }
 0x599   :  { %4689 = vmatpush3.bf16.xpose.msk.msra.mxu1 %vm5903_vm3, %v4687_v16 }
 0x59a   :  { %4690 = vmatprep.subr.bf16.mxu1 %v5495_v46 }
 0x59b   :  { %v5114_v43 = vpop.permute.xlu1 %5113 }
 0x59c   :  { %v5116_v16 = vunpack.i.h.bf16 %v5114_v43  ;;  %v5115_v0 = vunpack.i.l.bf16 %v5114_v43 }
 0x59e   :  { %v5422_v13 = vpop.eup %5421  ;;  %v4715_v62 = vpack.c.bf16 %v5116_v16, %v5115_v0 }
 0x59f   :  { %v6356_v31 = vmul.f32 %v5422_v13, %v6295_v8  ;;  %v5106_v8 = vunpack.i.h.bf16 %v5104_v40  ;;  %v5124_v10 = vpop.permute.xlu1 %5123  ;;  %v5161_v13 = vunpack.i.h.bf16 %v5159_v7 }
 0x5a0   :  { %v5125_v35 = vunpack.i.l.bf16 %v5124_v10 }
 0x5a1   :  { %4125 = vmatmul.mubr.f32.vlgmr.msra.gmra.mrb[40].mxu0 %v6356_v31  ;;  %4693 = vmatpush3.bf16.xpose.msk.msra.mxu1 %vm5903_vm3, %v4691_v26  ;;  %v4711_v56 = vpack.c.bf16 %v5106_v8, %v5105_v39  ;;  %v5160_v26 = vunpack.i.l.bf16 %v5159_v7 }
 0x5a2   :  { %4709 = vmatpush3.bf16.xpose.msk.msra.mxu0 %vm5903_vm3, %v4707_v19  ;;  %4694 = vmatprep.subr.bf16.mxu1 %v5495_v46  ;;  %v5126_v19 = vunpack.i.h.bf16 %v5124_v10 }
 0x5a3   :  { %4710 = vmatprep.subr.bf16.mxu0 %v5495_v46  ;;  %4194 = vmatprep.mubr.msk.f32.mxu0 %vm5496_vm1, %v5497_v6  ;;  %v4703_v40 = vpack.c.bf16 %v5161_v13, %v5160_v26  ;;  %v5134_v23 = vpop.permute.xlu1 %5133 }
 0x5a4   :  { %v4719_v52 = vpack.c.bf16 %v5126_v19, %v5125_v35  ;;  %v5136_v8 = vunpack.i.h.bf16 %v5134_v23  ;;  %v5135_v39 = vunpack.i.l.bf16 %v5134_v23 }
 0x5a6   :  { %v4723_v54 = vpack.c.bf16 %v5136_v8, %v5135_v39 }
 0x5a9   :  { %4697 = vmatpush3.bf16.xpose.msk.msra.mxu1 %vm5903_vm3, %v4695_v53  ;;  %v1873_v53 = vpop.permute.xlu0 %1872 }
 0x5aa   :  { %4713 = vmatpush3.bf16.xpose.msk.msra.mxu0 %vm5903_vm3, %v4711_v56  ;;  %4698 = vmatprep.subr.bf16.mxu1 %v5495_v46  ;;  %v5144_v56 = vpop.permute.xlu1 %5143 }
 0x5ab   :  { %4714 = vmatprep.subr.bf16.mxu0 %v5495_v46  ;;  %v5146_v43 = vunpack.i.h.bf16 %v5144_v56  ;;  %v5145_v60 = vunpack.i.l.bf16 %v5144_v56 }
 0x5ad   :  { %v4727_v61 = vpack.c.bf16 %v5146_v43, %v5145_v60 }
 0x5ae   :  { %v5154_v16 = vpop.permute.xlu1 %5153 }
 0x5af   :  { %v5156_v0 = vunpack.i.h.bf16 %v5154_v16 }
 0x5b1   :  { %4701 = vmatpush3.bf16.xpose.msk.msra.mxu1 %vm5903_vm3, %v4699_v4  ;;  %v5155_v4 = vunpack.i.l.bf16 %v5154_v16 }
 0x5b2   :  { %4717 = vmatpush3.bf16.xpose.msk.msra.mxu0 %vm5903_vm3, %v4715_v62  ;;  %4702 = vmatprep.subr.bf16.mxu1 %v5495_v46  ;;  %v5164_v62 = vpop.permute.xlu1 %5163 }
 0x5b3   :  { %4718 = vmatprep.subr.bf16.mxu0 %v5495_v46  ;;  %v4731_v7 = vpack.c.bf16 %v5156_v0, %v5155_v4  ;;  %v5166_v10 = vunpack.i.h.bf16 %v5164_v62  ;;  %v5165_v13 = vunpack.i.l.bf16 %v5164_v62 }
 0x5b5   :  { %v4735_v26 = vpack.c.bf16 %v5166_v10, %v5165_v13 }
 0x5b6   :  { %v2011_v19 = vpop.permute.xlu1 %2010 }
 0x5b9   :  { %4705 = vmatpush3.bf16.xpose.msk.msra.mxu1 %vm5903_vm3, %v4703_v40 }
 0x5ba   :  { %4721 = vmatpush3.bf16.xpose.msk.msra.mxu0 %vm5903_vm3, %v4719_v52  ;;  %4738 = vmatprep.subr.bf16.mxu1 %v5495_v46 }
 0x5bb   :  { %4722 = vmatprep.subr.bf16.mxu0 %v5495_v46 }
 0x5c0   :  { %4160 = vmatmul.mubr.msk.f32.vlgmr.msra.gmra.mrb[40].mxu1 %vm888_vm2, %v1873_v53 }
 0x5c1   :  { %4229 = vmatprep.mubr.msk.f32.mxu1 %vm5496_vm1, %v5497_v6 }
 0x5c2   :  { %4725 = vmatpush3.bf16.xpose.msk.msra.mxu0 %vm5903_vm3, %v4723_v54 }
 0x5c3   :  { %4726 = vmatprep.subr.bf16.mxu0 %v5495_v46 }
 0x5ca   :  { %4729 = vmatpush3.bf16.xpose.msk.msra.mxu0 %vm5903_vm3, %v4727_v61 }
 0x5cb   :  { %4730 = vmatprep.subr.bf16.mxu0 %v5495_v46 }
 0x5d2   :  { %4733 = vmatpush3.bf16.xpose.msk.msra.mxu0 %vm5903_vm3, %v4731_v7 }
 0x5d3   :  { %4734 = vmatprep.subr.bf16.mxu0 %v5495_v46 }
 0x5da   :  { %4737 = vmatpush3.bf16.xpose.msk.msra.mxu0 %vm5903_vm3, %v4735_v26 }
 0x5db   :  { %4762 = vmatprep.subr.bf16.mxu0 %v5495_v46 }
 0x5e1   :  { %4195 = vmatmul.mubr.msk.f32.vlgmr.msra.gmra.mrb[42].mxu0 %vm888_vm2, %v2011_v19 }
 0x5e2   :  { %4264 = vmatprep.mubr.msk.f32.mxu0 %vm5496_vm1, %v5497_v6 }
 0x653   :  { %v6403_v35 = vpop.f32.mrb[38].mxu1 }
 0x654   :  { %v4091_v40 = vpop.f32.mrb[39].mxu1 }
 0x674   :  { %v6405_v52 = vpop.f32.mrb[40].mxu0 }
 0x675   :  { %v4126_v23 = vpop.f32.mrb[41].mxu0 }
 0x693   :  { %v2006_v8 = vpop.f32.mrb[40].mxu1 }
 0x694   :  { %v2007_v39 = vadd.f32 %v6138_v48, %v2006_v8  ;;  %v4161_v53 = vpop.f32.mrb[41].mxu1 }
 0x696   :  { %2148 = vmax.xlane.f32.xlu0 %v2007_v39 }
 0x6ac   :  { %5168 = vrot.lane.b32.xlu0 %v6058_v20, %s5499_s21 }
 0x6b0   :  { %5178 = vrot.lane.b32.xlu0 %v6063_v29, %s5499_s21 }
 0x6b4   :  { %v2144_v54 = vpop.f32.mrb[42].mxu0  ;;  %5188 = vrot.lane.b32.xlu0 %v6068_v38, %s5499_s21 }
 0x6b5   :  { %v2145_v56 = vadd.f32 %v6144_v41, %v2144_v54  ;;  %v4196_v43 = vpop.f32.mrb[43].mxu0 }
 0x6b7   :  { %2150 = vmax.xlane.f32.xlu1 %v2145_v56 }
 0x6b8   :  { %5203 = vrot.lane.b32.xlu0 %v6113_v2, %s5499_s21 }
 0x6bc   :  { %5213 = vrot.lane.b32.xlu0 %v6118_v15, %s5499_s21 }
 0x6c0   :  { %5218 = vrot.lane.b32.xlu0 %v6083_v3, %s5499_s21 }
 0x6c4   :  { %5228 = vrot.lane.b32.xlu0 %v6088_v14, %s5499_s21 }
 0x6c8   :  { %5173 = vrot.lane.b32.xlu1 %v6098_v32, %s5499_s21  ;;  %5238 = vrot.lane.b32.xlu0 %v6093_v21, %s5499_s21 }
 0x6cc   :  { %5183 = vrot.lane.b32.xlu1 %v6103_v45, %s5499_s21 }
 0x6d0   :  { %5193 = vrot.lane.b32.xlu1 %v6108_v55, %s5499_s21 }
 0x6d4   :  { %5198 = vrot.lane.b32.xlu1 %v6073_v49, %s5499_s21 }
 0x6d8   :  { %5208 = vrot.lane.b32.xlu1 %v6078_v59, %s5499_s21 }
 0x6dc   :  { %5223 = vrot.lane.b32.xlu1 %v6123_v24, %s5499_s21 }
 0x6e0   :  { %5233 = vrot.lane.b32.xlu1 %v6128_v37, %s5499_s21 }
 0x6e4   :  { %5243 = vrot.lane.b32.xlu1 %v6132_v47, %s5499_s21 }
 0x6e8   :  { %5253 = vrot.lane.b32.xlu1 %v5963_v17, %s5500_s22 }
 0x723   :  { %v2149_v48 = vpop.xlane.xlu0 %2148 }
 0x724   :  { %v2152_v41 = vsub.f32 %v2007_v39, %v2149_v48 }
 0x726   :  { %v2154_v60 = vmul.f32 1.442695, %v2152_v41 }
 0x727   :  { %v5169_v61 = vpop.permute.xlu0 %5168 }
 0x728   :  { %5423 = vpow2.f32 %v2154_v60  ;;  %v5171_v16 = vunpack.i.h.bf16 %v5169_v61  ;;  %v5170_v0 = vunpack.i.l.bf16 %v5169_v61 }
 0x72a   :  { %v4739_v4 = vpack.c.bf16 %v5171_v16, %v5170_v0 }
 0x72b   :  { %v5179_v7 = vpop.permute.xlu0 %5178 }
 0x72c   :  { %v5181_v62 = vunpack.i.h.bf16 %v5179_v7  ;;  %v5180_v10 = vunpack.i.l.bf16 %v5179_v7  ;;  %4740 = vmatpush3.bf16.msra.mxu1 %v4739_v4 }
 0x72d   :  { %4741 = vmatprep.subr.bf16.mxu1 %v5495_v46 }
 0x72e   :  { %v4742_v13 = vpack.c.bf16 %v5181_v62, %v5180_v10 }
 0x72f   :  { %v5189_v26 = vpop.permute.xlu0 %5188 }
 0x730   :  { %v5191_v19 = vunpack.i.h.bf16 %v5189_v26  ;;  %v5190_v40 = vunpack.i.l.bf16 %v5189_v26  ;;  %4743 = vmatpush3.bf16.msra.mxu1 %v4742_v13 }
 0x731   :  { %4744 = vmatprep.subr.bf16.mxu1 %v5495_v46 }
 0x732   :  { %v6445_v17 = vpop.eup %5423  ;;  %v4745_v23 = vpack.c.bf16 %v5191_v19, %v5190_v40 }
 0x733   :  { %2158 = vadd.xlane.f32.xlu0 %v6445_v17  ;;  %v5204_v54 = vpop.permute.xlu0 %5203 }
 0x734   :  { %4746 = vmatpush3.bf16.msra.mxu1 %v4745_v23  ;;  %v5206_v13 = vunpack.i.h.bf16 %v5204_v54  ;;  %v5205_v26 = vunpack.i.l.bf16 %v5204_v54 }
 0x735   :  { %4747 = vmatprep.subr.bf16.mxu1 %v5495_v46 }
 0x737   :  { %v5214_v4 = vpop.permute.xlu0 %5213 }
 0x73b   :  { %v5219_v40 = vpop.permute.xlu0 %5218 }
 0x744   :  { %v2151_v8 = vpop.xlane.xlu1 %2150 }
 0x745   :  { %v2153_v39 = vsub.f32 %v2145_v56, %v2151_v8 }
 0x747   :  { %v2156_v53 = vmul.f32 1.442695, %v2153_v39  ;;  %v5216_v39 = vunpack.i.h.bf16 %v5214_v4 }
 0x748   :  { %v5174_v43 = vpop.permute.xlu1 %5173 }
 0x749   :  { %5425 = vpow2.f32 %v2156_v53  ;;  %v5176_v48 = vunpack.i.h.bf16 %v5174_v43  ;;  %v5175_v41 = vunpack.i.l.bf16 %v5174_v43  ;;  %5248 = vrot.lane.b32.xlu0 %v5907_v30, %s5500_s22  ;;  %v5215_v53 = vunpack.i.l.bf16 %v5214_v4 }
 0x74b   :  { %v4763_v60 = vpack.c.bf16 %v5176_v48, %v5175_v41 }
 0x74c   :  { %v5184_v61 = vpop.permute.xlu1 %5183 }
 0x74d   :  { %v5186_v16 = vunpack.i.h.bf16 %v5184_v61  ;;  %v5185_v0 = vunpack.i.l.bf16 %v5184_v61  ;;  %4764 = vmatpush3.bf16.msra.mxu0 %v4763_v60  ;;  %5258 = vrot.lane.b32.xlu0 %v5914_v36, %s5500_s22  ;;  %v5229_v60 = vpop.permute.xlu0 %5228  ;;  %v4775_v61 = vpack.c.bf16 %v5216_v39, %v5215_v53 }
 0x74e   :  { %4765 = vmatprep.subr.bf16.mxu0 %v5495_v46 }
 0x74f   :  { %v4766_v56 = vpack.c.bf16 %v5186_v16, %v5185_v0  ;;  %v5221_v16 = vunpack.i.h.bf16 %v5219_v40 }
 0x750   :  { %v5194_v7 = vpop.permute.xlu1 %5193 }
 0x751   :  { %v5196_v62 = vunpack.i.h.bf16 %v5194_v7  ;;  %v5195_v10 = vunpack.i.l.bf16 %v5194_v7  ;;  %4767 = vmatpush3.bf16.msra.mxu0 %v4766_v56  ;;  %5268 = vrot.lane.b32.xlu0 %v5922_v44, %s5500_s22  ;;  %v4772_v44 = vpack.c.bf16 %v5206_v13, %v5205_v26  ;;  %v5239_v26 = vpop.permute.xlu0 %5238 }
 0x752   :  { %4768 = vmatprep.subr.bf16.mxu0 %v5495_v46 }
 0x753   :  { %v6457_v30 = vpop.eup %5425  ;;  %v4769_v19 = vpack.c.bf16 %v5196_v62, %v5195_v10  ;;  %v5230_v10 = vunpack.i.l.bf16 %v5229_v60 }
 0x754   :  { %2160 = vadd.xlane.f32.xlu1 %v6457_v30  ;;  %v5199_v36 = vpop.permute.xlu1 %5198 }
 0x755   :  { %v5201_v23 = vunpack.i.h.bf16 %v5199_v36  ;;  %v5200_v8 = vunpack.i.l.bf16 %v5199_v36  ;;  %4770 = vmatpush3.bf16.msra.mxu0 %v4769_v19  ;;  %5278 = vrot.lane.b32.xlu0 %v5929_v51, %s5500_s22  ;;  %v5220_v51 = vunpack.i.l.bf16 %v5219_v40 }
 0x756   :  { %4771 = vmatprep.subr.bf16.mxu0 %v5495_v46 }
 0x757   :  { %v4748_v43 = vpack.c.bf16 %v5201_v23, %v5200_v8  ;;  %v4754_v62 = vpack.c.bf16 %v5221_v16, %v5220_v51  ;;  %v5241_v23 = vunpack.i.h.bf16 %v5239_v26  ;;  %v5240_v8 = vunpack.i.l.bf16 %v5239_v26 }
 0x758   :  { %v5209_v48 = vpop.permute.xlu1 %5208 }
 0x759   :  { %v5211_v41 = vunpack.i.h.bf16 %v5209_v48  ;;  %v5210_v54 = vunpack.i.l.bf16 %v5209_v48  ;;  %4749 = vmatpush3.bf16.msra.mxu1 %v4748_v43  ;;  %4773 = vmatpush3.bf16.msra.mxu0 %v4772_v44 }
 0x75a   :  { %5288 = vrot.lane.b32.xlu0 %v5933_v57, %s5500_s22  ;;  %4750 = vmatprep.subr.bf16.mxu1 %v5495_v46  ;;  %v5231_v57 = vunpack.i.h.bf16 %v5229_v60 }
 0x75b   :  { %v4751_v0 = vpack.c.bf16 %v5211_v41, %v5210_v54  ;;  %4774 = vmatprep.subr.bf16.mxu0 %v5495_v46 }
 0x75c   :  { %v5224_v56 = vpop.permute.xlu1 %5223 }
 0x75d   :  { %v5226_v4 = vunpack.i.h.bf16 %v5224_v56  ;;  %v5225_v7 = vunpack.i.l.bf16 %v5224_v56  ;;  %4752 = vmatpush3.bf16.msra.mxu1 %v4751_v0  ;;  %4776 = vmatpush3.bf16.msra.mxu0 %v4775_v61 }
 0x75e   :  { %5298 = vrot.lane.b32.xlu0 %v5940_v63, %s5500_s22  ;;  %4753 = vmatprep.subr.bf16.mxu1 %v5495_v46  ;;  %v4757_v63 = vpack.c.bf16 %v5231_v57, %v5230_v10 }
 0x75f   :  { %v4778_v13 = vpack.c.bf16 %v5226_v4, %v5225_v7  ;;  %4777 = vmatprep.subr.bf16.mxu0 %v5495_v46 }
 0x760   :  { %v5234_v19 = vpop.permute.xlu1 %5233 }
 0x761   :  { %v5236_v40 = vunpack.i.h.bf16 %v5234_v19  ;;  %v5235_v36 = vunpack.i.l.bf16 %v5234_v19  ;;  %4755 = vmatpush3.bf16.msra.mxu1 %v4754_v62  ;;  %4779 = vmatpush3.bf16.msra.mxu0 %v4778_v13  ;;  %v1590_v19 = vadd.f32 %v6356_v31, %v6196_v28 }
 0x762   :  { %5308 = vrot.lane.b32.xlu0 %v5944_v5, %s5500_s22  ;;  %4756 = vmatprep.subr.bf16.mxu1 %v5495_v46  ;;  %v4760_v5 = vpack.c.bf16 %v5241_v23, %v5240_v8 }
 0x763   :  { %v4781_v44 = vpack.c.bf16 %v5236_v40, %v5235_v36  ;;  %4780 = vmatprep.subr.bf16.mxu0 %v5495_v46 }
 0x764   :  { %v5244_v39 = vpop.permute.xlu1 %5243 }
 0x765   :  { %v5246_v53 = vunpack.i.h.bf16 %v5244_v39  ;;  %v5245_v43 = vunpack.i.l.bf16 %v5244_v39  ;;  %5263 = vrot.lane.b32.xlu1 %v5975_v25, %s5500_s22  ;;  %4758 = vmatpush3.bf16.msra.mxu1 %v4757_v63 }
 0x766   :  { %4782 = vmatpush3.bf16.msra.mxu0 %v4781_v44  ;;  %5318 = vrot.lane.b32.xlu0 %v5959_v12, %s5500_s22 }
 0x767   :  { %v4784_v48 = vpack.c.bf16 %v5246_v53, %v5245_v43  ;;  %4759 = vmatprep.subr.bf16.mxu1 %v5495_v46  ;;  %4783 = vmatprep.subr.bf16.mxu0 %v5495_v46 }
 0x769   :  { %5273 = vrot.lane.b32.xlu1 %v5981_v33, %s5500_s22  ;;  %4761 = vmatpush3.bf16.msra.mxu1 %v4760_v5 }
 0x76a   :  { %4785 = vmatpush3.bf16.msra.mxu0 %v4784_v48  ;;  %2419 = vrot.lane.b32.xlu0 %v6025_v11, %s5500_s22 }
 0x76b   :  { %4786 = vmatprep.subr.bf16.mxu1 %v5495_v46  ;;  %4818 = vmatprep.subr.bf16.mxu0 %v5495_v46 }
 0x76d   :  { %5283 = vrot.lane.b32.xlu1 %v5991_v42, %s5500_s22 }
 0x771   :  { %5293 = vrot.lane.b32.xlu1 %v5995_v50, %s5500_s22 }
 0x775   :  { %5303 = vrot.lane.b32.xlu1 %v6005_v58, %s5500_s22  ;;  %v1589_v58 = vadd.f32 %v6338_v18, %v6179_v34 }
 0x779   :  { %5313 = vrot.lane.b32.xlu1 %v6009_v1, %s5500_s22 }
 0x77d   :  { %5323 = vrot.lane.b32.xlu1 %v6022_v9, %s5500_s22 }
 0x781   :  { %2557 = vrot.lane.b32.xlu1 %v6044_v22, %s5500_s22 }
 0x785   :  { %5333 = vrot.lane.b32.xlu1 %v6098_v32, %s5500_s22 }
 0x7c0   :  { %v2159_v12 = vpop.xlane.xlu0 %2158 }
 0x7c1   :  { %5427 = vrcp.f32 %v2159_v12 }
 0x7c4   :  { %v5249_v25 = vpop.permute.xlu0 %5248 }
 0x7c5   :  { %v5251_v33 = vunpack.i.h.bf16 %v5249_v25  ;;  %v5250_v42 = vunpack.i.l.bf16 %v5249_v25 }
 0x7c7   :  { %v4787_v11 = vpack.c.bf16 %v5251_v33, %v5250_v42 }
 0x7c8   :  { %v5259_v41 = vpop.permute.xlu0 %5258 }
 0x7c9   :  { %v5261_v22 = vunpack.i.h.bf16 %v5259_v41  ;;  %v5260_v32 = vunpack.i.l.bf16 %v5259_v41 }
 0x7cb   :  { %v5428_v50 = vpop.eup %5427  ;;  %v4791_v54 = vpack.c.bf16 %v5261_v22, %v5260_v32 }
 0x7cc   :  { %v2164_v1 = vmul.f32 %v5428_v50, %v6445_v17  ;;  %v5269_v60 = vpop.permute.xlu0 %5268  ;;  %v5254_v17 = vpop.permute.xlu1 %5253 }
 0x7cd   :  { %v5271_v34 = vunpack.i.h.bf16 %v5269_v60  ;;  %v5270_v18 = vunpack.i.l.bf16 %v5269_v60  ;;  %v5256_v10 = vunpack.i.h.bf16 %v5254_v17  ;;  %v5255_v13 = vunpack.i.l.bf16 %v5254_v17 }
 0x7ce   :  { %v6504_v9 = vadd.f32 %v2164_v1, %v1589_v58  ;;  %4230 = vmatmul.mubr.f32.vlgmr.msra.gmra.mrb[42].mxu1 %v2164_v1 }
 0x7cf   :  { %4789 = vmatpush3.bf16.xpose.msk.msra.mxu1 %vm5903_vm3, %v4787_v11  ;;  %4299 = vmatprep.mubr.msk.f32.mxu1 %vm5496_vm1, %v5497_v6  ;;  %v4795_v61 = vpack.c.bf16 %v5271_v34, %v5270_v18  ;;  %v4819_v63 = vpack.c.bf16 %v5256_v10, %v5255_v13 }
 0x7d0   :  { %4790 = vmatprep.subr.bf16.mxu1 %v5495_v46  ;;  %v5279_v16 = vpop.permute.xlu0 %5278 }
 0x7d1   :  { %v5281_v51 = vunpack.i.h.bf16 %v5279_v16  ;;  %v5280_v0 = vunpack.i.l.bf16 %v5279_v16 }
 0x7d3   :  { %v4799_v4 = vpack.c.bf16 %v5281_v51, %v5280_v0 }
 0x7d4   :  { %v5289_v7 = vpop.permute.xlu0 %5288 }
 0x7d5   :  { %v5291_v62 = vunpack.i.h.bf16 %v5289_v7  ;;  %v5290_v57 = vunpack.i.l.bf16 %v5289_v7 }
 0x7d7   :  { %4793 = vmatpush3.bf16.xpose.msk.msra.mxu1 %vm5903_vm3, %v4791_v54  ;;  %v4803_v40 = vpack.c.bf16 %v5291_v62, %v5290_v57 }
 0x7d8   :  { %4794 = vmatprep.subr.bf16.mxu1 %v5495_v46  ;;  %v5299_v23 = vpop.permute.xlu0 %5298 }
 0x7d9   :  { %v5301_v39 = vunpack.i.h.bf16 %v5299_v23  ;;  %v5300_v53 = vunpack.i.l.bf16 %v5299_v23 }
 0x7dc   :  { %v5309_v43 = vpop.permute.xlu0 %5308 }
 0x7dd   :  { %v5311_v12 = vunpack.i.h.bf16 %v5309_v43  ;;  %v5310_v25 = vunpack.i.l.bf16 %v5309_v43 }
 0x7df   :  { %4797 = vmatpush3.bf16.xpose.msk.msra.mxu1 %vm5903_vm3, %v4795_v61  ;;  %v4811_v50 = vpack.c.bf16 %v5311_v12, %v5310_v25  ;;  %v5444_v25 = vld [vmem:[%s6721_s3 + $0x1] ss:$0 sm:$0xff] }
 0x7e0   :  { %4798 = vmatprep.subr.bf16.mxu1 %v5495_v46  ;;  %v5319_v58 = vpop.permute.xlu0 %5318 }
 0x7e1   :  { %v2161_v56 = vpop.xlane.xlu1 %2160  ;;  %v5321_v41 = vunpack.i.h.bf16 %v5319_v58  ;;  %v5320_v22 = vunpack.i.l.bf16 %v5319_v58 }
 0x7e2   :  { %5429 = vrcp.f32 %v2161_v56 }
 0x7e3   :  { %v4815_v60 = vpack.c.bf16 %v5321_v41, %v5320_v22 }
 0x7e4   :  { %v2420_v16 = vpop.permute.xlu0 %2419 }
 0x7e5   :  { %v5264_v8 = vpop.permute.xlu1 %5263 }
 0x7e6   :  { %v5266_v28 = vunpack.i.h.bf16 %v5264_v8  ;;  %v5265_v31 = vunpack.i.l.bf16 %v5264_v8 }
 0x7e7   :  { %4801 = vmatpush3.bf16.xpose.msk.msra.mxu1 %vm5903_vm3, %v4799_v4 }
 0x7e8   :  { %4802 = vmatprep.subr.bf16.mxu1 %v5495_v46  ;;  %v4823_v5 = vpack.c.bf16 %v5266_v28, %v5265_v31 }
 0x7e9   :  { %v5274_v48 = vpop.permute.xlu1 %5273 }
 0x7ea   :  { %v5276_v33 = vunpack.i.h.bf16 %v5274_v48  ;;  %v5275_v42 = vunpack.i.l.bf16 %v5274_v48 }
 0x7ec   :  { %v5430_v26 = vpop.eup %5429  ;;  %v4827_v1 = vpack.c.bf16 %v5276_v33, %v5275_v42 }
 0x7ed   :  { %v2165_v36 = vmul.f32 %v5430_v26, %v6457_v30  ;;  %v4807_v30 = vpack.c.bf16 %v5301_v39, %v5300_v53  ;;  %v5284_v11 = vpop.permute.xlu1 %5283 }
 0x7ee   :  { %v5286_v32 = vunpack.i.h.bf16 %v5284_v11  ;;  %v5285_v54 = vunpack.i.l.bf16 %v5284_v11 }
 0x7ef   :  { %v6523_v44 = vadd.f32 %v2165_v36, %v1590_v19  ;;  %4265 = vmatmul.mubr.f32.vlgmr.msra.gmra.mrb[44].mxu0 %v2165_v36  ;;  %4805 = vmatpush3.bf16.xpose.msk.msra.mxu1 %vm5903_vm3, %v4803_v40 }
 0x7f0   :  { %4821 = vmatpush3.bf16.xpose.msk.msra.mxu0 %vm5903_vm3, %v4819_v63  ;;  %4806 = vmatprep.subr.bf16.mxu1 %v5495_v46  ;;  %v4831_v34 = vpack.c.bf16 %v5286_v32, %v5285_v54 }
 0x7f1   :  { %4822 = vmatprep.subr.bf16.mxu0 %v5495_v46  ;;  %4334 = vmatprep.mubr.msk.f32.mxu0 %vm5496_vm1, %v5497_v6  ;;  %v5294_v18 = vpop.permute.xlu1 %5293 }
 0x7f2   :  { %v5296_v17 = vunpack.i.h.bf16 %v5294_v18  ;;  %v5295_v61 = vunpack.i.l.bf16 %v5294_v18 }
 0x7f4   :  { %v4835_v51 = vpack.c.bf16 %v5296_v17, %v5295_v61 }
 0x7f5   :  { %v5304_v0 = vpop.permute.xlu1 %5303 }
 0x7f6   :  { %v5306_v56 = vunpack.i.h.bf16 %v5304_v0  ;;  %v5305_v4 = vunpack.i.l.bf16 %v5304_v0 }
 0x7f7   :  { %4809 = vmatpush3.bf16.xpose.msk.msra.mxu1 %vm5903_vm3, %v4807_v30 }
 0x7f8   :  { %4825 = vmatpush3.bf16.xpose.msk.msra.mxu0 %vm5903_vm3, %v4823_v5  ;;  %4810 = vmatprep.subr.bf16.mxu1 %v5495_v46  ;;  %v4839_v62 = vpack.c.bf16 %v5306_v56, %v5305_v4  ;;  %v5443_v5 = vld [vmem:[%s6721_s3] ss:$0 sm:$0xff]  ;;  %s5501_s3 = smov 16  }
 0x7f9   :  { %4826 = vmatprep.subr.bf16.mxu0 %v5495_v46  ;;  %v5314_v7 = vpop.permute.xlu1 %5313 }
 0x7fa   :  { %v5316_v57 = vunpack.i.h.bf16 %v5314_v7  ;;  %v5315_v10 = vunpack.i.l.bf16 %v5314_v7 }
 0x7fc   :  { %v4843_v26 = vpack.c.bf16 %v5316_v57, %v5315_v10 }
 0x7fd   :  { %v5324_v13 = vpop.permute.xlu1 %5323 }
 0x7fe   :  { %v5326_v40 = vunpack.i.h.bf16 %v5324_v13  ;;  %v5325_v36 = vunpack.i.l.bf16 %v5324_v13 }
 0x7ff   :  { %4813 = vmatpush3.bf16.xpose.msk.msra.mxu1 %vm5903_vm3, %v4811_v50 }
 0x800   :  { %4829 = vmatpush3.bf16.xpose.msk.msra.mxu0 %vm5903_vm3, %v4827_v1  ;;  %4814 = vmatprep.subr.bf16.mxu1 %v5495_v46  ;;  %v4847_v63 = vpack.c.bf16 %v5326_v40, %v5325_v36 }
 0x801   :  { %4830 = vmatprep.subr.bf16.mxu0 %v5495_v46  ;;  %v2558_v19 = vpop.permute.xlu1 %2557 }
 0x805   :  { %v5334_v23 = vpop.permute.xlu1 %5333 }
 0x806   :  { %v5336_v8 = vunpack.i.h.bf16 %v5334_v23  ;;  %v5335_v39 = vunpack.i.l.bf16 %v5334_v23 }
 0x807   :  { %4817 = vmatpush3.bf16.xpose.msk.msra.mxu1 %vm5903_vm3, %v4815_v60 }
 0x808   :  { %4833 = vmatpush3.bf16.xpose.msk.msra.mxu0 %vm5903_vm3, %v4831_v34  ;;  %4850 = vmatprep.subr.bf16.mxu1 %v5495_v46  ;;  %v4875_v53 = vpack.c.bf16 %v5336_v8, %v5335_v39 }
 0x809   :  { %4834 = vmatprep.subr.bf16.mxu0 %v5495_v46 }
 0x80e   :  { %4300 = vmatmul.mubr.msk.f32.vlgmr.msra.gmra.mrb[44].mxu1 %vm888_vm2, %v2420_v16 }
 0x80f   :  { %4369 = vmatprep.mubr.msk.f32.mxu1 %vm5496_vm1, %v5497_v6 }
 0x810   :  { %4837 = vmatpush3.bf16.xpose.msk.msra.mxu0 %vm5903_vm3, %v4835_v51 }
 0x811   :  { %4838 = vmatprep.subr.bf16.mxu0 %v5495_v46 }
 0x818   :  { %4841 = vmatpush3.bf16.xpose.msk.msra.mxu0 %vm5903_vm3, %v4839_v62 }
 0x819   :  { %4842 = vmatprep.subr.bf16.mxu0 %v5495_v46 }
 0x820   :  { %4845 = vmatpush3.bf16.xpose.msk.msra.mxu0 %vm5903_vm3, %v4843_v26 }
 0x821   :  { %4846 = vmatprep.subr.bf16.mxu0 %v5495_v46 }
 0x828   :  { %4849 = vmatpush3.bf16.xpose.msk.msra.mxu0 %vm5903_vm3, %v4847_v63 }
 0x829   :  { %4874 = vmatprep.subr.bf16.mxu0 %v5495_v46 }
 0x82f   :  { %4335 = vmatmul.mubr.msk.f32.vlgmr.msra.gmra.mrb[46].mxu0 %vm888_vm2, %v2558_v19 }
 0x830   :  { %4876 = vmatpush3.bf16.msra.mxu0 %v4875_v53  ;;  %4404 = vmatprep.mubr.msk.f32.mxu0 %vm5496_vm1, %v5497_v6 }
 0x831   :  { %4877 = vmatprep.subr.bf16.mxu0 %v5495_v46 }
 0x8a1   :  { %v6570_v28 = vpop.f32.mrb[42].mxu1 }
 0x8a2   :  { %v4231_v31 = vpop.f32.mrb[43].mxu1 }
 0x8c2   :  { %v6572_v30 = vpop.f32.mrb[44].mxu0 }
 0x8c3   :  { %v4266_v27 = vpop.f32.mrb[45].mxu0 }
 0x8e1   :  { %v2553_v43 = vpop.f32.mrb[44].mxu1 }
 0x8e2   :  { %v2554_v48 = vadd.f32 %v5443_v5, %v2553_v43  ;;  %v4301_v12 = vpop.f32.mrb[45].mxu1 }
 0x8e4   :  { %2695 = vmax.xlane.f32.xlu0 %v2554_v48 }
 0x8fa   :  { %5328 = vrot.lane.b32.xlu0 %v6058_v20, %s5500_s22 }
 0x8fe   :  { %5338 = vrot.lane.b32.xlu0 %v6063_v29, %s5500_s22 }
 0x902   :  { %v2691_v6 = vpop.f32.mrb[46].mxu0  ;;  %5348 = vrot.lane.b32.xlu0 %v6068_v38, %s5500_s22 }
 0x903   :  { %v6586_v33 = vadd.f32 %v5444_v25, %v2691_v6  ;;  %v4336_v42 = vpop.f32.mrb[47].mxu0 }
 0x905   :  { %2697 = vmax.xlane.f32.xlu1 %v6586_v33 }
 0x906   :  { %5358 = vrot.lane.b32.xlu0 %v6073_v49, %s5500_s22 }
 0x90a   :  { %5368 = vrot.lane.b32.xlu0 %v6078_v59, %s5500_s22 }
 0x90e   :  { %5378 = vrot.lane.b32.xlu0 %v6083_v3, %s5500_s22 }
 0x912   :  { %5388 = vrot.lane.b32.xlu0 %v6088_v14, %s5500_s22 }
 0x916   :  { %5343 = vrot.lane.b32.xlu1 %v6103_v45, %s5500_s22 }
 0x91a   :  { %5353 = vrot.lane.b32.xlu1 %v6108_v55, %s5500_s22 }
 0x91e   :  { %5363 = vrot.lane.b32.xlu1 %v6113_v2, %s5500_s22 }
 0x922   :  { %5373 = vrot.lane.b32.xlu1 %v6118_v15, %s5500_s22 }
 0x926   :  { %5383 = vrot.lane.b32.xlu1 %v6123_v24, %s5500_s22 }
 0x92a   :  { %5393 = vrot.lane.b32.xlu1 %v6128_v37, %s5500_s22 }
 0x971   :  { %v2696_v20 = vpop.xlane.xlu0 %2695 }
 0x972   :  { %v2699_v29 = vsub.f32 %v2554_v48, %v2696_v20 }
 0x974   :  { %v2701_v38 = vmul.f32 1.442695, %v2699_v29 }
 0x975   :  { %v5329_v49 = vpop.permute.xlu0 %5328 }
 0x976   :  { %5431 = vpow2.f32 %v2701_v38  ;;  %v5331_v59 = vunpack.i.h.bf16 %v5329_v49  ;;  %v5330_v3 = vunpack.i.l.bf16 %v5329_v49 }
 0x978   :  { %v4851_v14 = vpack.c.bf16 %v5331_v59, %v5330_v3 }
 0x979   :  { %v5339_v45 = vpop.permute.xlu0 %5338 }
 0x97a   :  { %v5341_v55 = vunpack.i.h.bf16 %v5339_v45  ;;  %v5340_v2 = vunpack.i.l.bf16 %v5339_v45  ;;  %4852 = vmatpush3.bf16.msra.mxu1 %v4851_v14 }
 0x97b   :  { %4853 = vmatprep.subr.bf16.mxu1 %v5495_v46 }
 0x97c   :  { %v4854_v15 = vpack.c.bf16 %v5341_v55, %v5340_v2 }
 0x97d   :  { %v5349_v50 = vpop.permute.xlu0 %5348 }
 0x97e   :  { %v5351_v24 = vunpack.i.h.bf16 %v5349_v50  ;;  %v5350_v58 = vunpack.i.l.bf16 %v5349_v50  ;;  %4855 = vmatpush3.bf16.msra.mxu1 %v4854_v15 }
 0x97f   :  { %4856 = vmatprep.subr.bf16.mxu1 %v5495_v46 }
 0x980   :  { %v6611_v37 = vpop.eup %5431  ;;  %v4857_v1 = vpack.c.bf16 %v5351_v24, %v5350_v58 }
 0x981   :  { %2705 = vadd.xlane.f32.xlu0 %v6611_v37  ;;  %v5359_v11 = vpop.permute.xlu0 %5358 }
 0x982   :  { %v5361_v41 = vunpack.i.h.bf16 %v5359_v11  ;;  %v5360_v22 = vunpack.i.l.bf16 %v5359_v11  ;;  %4858 = vmatpush3.bf16.msra.mxu1 %v4857_v1 }
 0x983   :  { %4859 = vmatprep.subr.bf16.mxu1 %v5495_v46 }
 0x984   :  { %v4860_v32 = vpack.c.bf16 %v5361_v41, %v5360_v22 }
 0x985   :  { %v5369_v54 = vpop.permute.xlu0 %5368 }
 0x986   :  { %v5371_v60 = vunpack.i.h.bf16 %v5369_v54  ;;  %v5370_v34 = vunpack.i.l.bf16 %v5369_v54  ;;  %4861 = vmatpush3.bf16.msra.mxu1 %v4860_v32  ;;  %v2974_v32 = vld [vmem:[%s6728_s10] sm:$0xff]  ;;  %v2975_v54 = vld [vmem:[%s6728_s10 + $0x8] sm:$0xff] }
 0x987   :  { %4862 = vmatprep.subr.bf16.mxu1 %v5495_v46 }
 0x988   :  { %v4863_v18 = vpack.c.bf16 %v5371_v60, %v5370_v34  ;;  %v2976_v60 = vld [vmem:[%s6728_s10 + $0x10] sm:$0xff]  ;;  %v4898_v34 = vpack.c.bf16 %v2975_v54, %v2974_v32 }
 0x989   :  { %v5379_v17 = vpop.permute.xlu0 %5378 }
 0x98a   :  { %v5381_v61 = vunpack.i.h.bf16 %v5379_v17  ;;  %v5380_v16 = vunpack.i.l.bf16 %v5379_v17  ;;  %4864 = vmatpush3.bf16.msra.mxu1 %v4863_v18 }
 0x98b   :  { %4865 = vmatprep.subr.bf16.mxu1 %v5495_v46 }
 0x98c   :  { %v4866_v51 = vpack.c.bf16 %v5381_v61, %v5380_v16  ;;  %v2978_v16 = vld [vmem:[%s6728_s10 + $0x20] sm:$0xff] }
 0x98d   :  { %v5389_v0 = vpop.permute.xlu0 %5388 }
 0x98e   :  { %v5391_v56 = vunpack.i.h.bf16 %v5389_v0  ;;  %v5390_v4 = vunpack.i.l.bf16 %v5389_v0  ;;  %4867 = vmatpush3.bf16.msra.mxu1 %v4866_v51  ;;  %v2979_v51 = vld [vmem:[%s6728_s10 + $0x28] sm:$0xff] }
 0x98f   :  { %4868 = vmatprep.subr.bf16.mxu1 %v5495_v46  ;;  %v4906_v0 = vpack.c.bf16 %v2979_v51, %v2978_v16 }
 0x990   :  { %v4869_v7 = vpack.c.bf16 %v5391_v56, %v5390_v4  ;;  %v2980_v56 = vld [vmem:[%s6728_s10 + $0x30] sm:$0xff]  ;;  %v2981_v4 = vld [vmem:[%s6728_s10 + $0x38] sm:$0xff] }
 0x992   :  { %v2698_v62 = vpop.xlane.xlu1 %2697  ;;  %4870 = vmatpush3.bf16.msra.mxu1 %v4869_v7  ;;  %v4910_v7 = vpack.c.bf16 %v2981_v4, %v2980_v56 }
 0x993   :  { %v2700_v57 = vsub.f32 %v6586_v33, %v2698_v62  ;;  %4871 = vmatprep.subr.bf16.mxu1 %v5495_v46 }
 0x995   :  { %v2703_v10 = vmul.f32 1.442695, %v2700_v57 }
 0x996   :  { %v5344_v13 = vpop.permute.xlu1 %5343 }
 0x997   :  { %5433 = vpow2.f32 %v2703_v10  ;;  %v5346_v26 = vunpack.i.h.bf16 %v5344_v13  ;;  %v5345_v19 = vunpack.i.l.bf16 %v5344_v13  ;;  %5398 = vrot.lane.b32.xlu0 %v6093_v21, %s5500_s22 }
 0x999   :  { %v4878_v40 = vpack.c.bf16 %v5346_v26, %v5345_v19 }
 0x99a   :  { %v5354_v36 = vpop.permute.xlu1 %5353 }
 0x99b   :  { %v5356_v63 = vunpack.i.h.bf16 %v5354_v36  ;;  %v5355_v23 = vunpack.i.l.bf16 %v5354_v36  ;;  %4879 = vmatpush3.bf16.msra.mxu0 %v4878_v40  ;;  %1863 = vrot.lane.b32.xlu0 %v6403_v35, %s5501_s3  ;;  %v3359_v40 = vld [vmem:[%s6729_s11] ss:$0 sm:$0xff] }
 0x99c   :  { %4880 = vmatprep.subr.bf16.mxu0 %v5495_v46 }
 0x99d   :  { %v4881_v8 = vpack.c.bf16 %v5356_v63, %v5355_v23 }
 0x99e   :  { %v5364_v39 = vpop.permute.xlu1 %5363 }
 0x99f   :  { %v5366_v53 = vunpack.i.h.bf16 %v5364_v39  ;;  %v5365_v31 = vunpack.i.l.bf16 %v5364_v39  ;;  %4882 = vmatpush3.bf16.msra.mxu0 %v4881_v8  ;;  %2410 = vrot.lane.b32.xlu0 %v6570_v28, %s5502_s26  ;;  %v5445_v39 = vld [vmem:[%s6718_s0 + $0x8] sm:$0xff] }
 0x9a0   :  { %4883 = vmatprep.subr.bf16.mxu0 %v5495_v46 }
 0x9a1   :  { %v5434_v21 = vpop.eup %5433  ;;  %v4884_v27 = vpack.c.bf16 %v5366_v53, %v5365_v31  ;;  %v5446_v31 = vld [vmem:[%s6718_s0] sm:$0xff]  ;;  %s5504_s0 = smov [#allocation5]  }
 0x9a2   :  { %2707 = vadd.xlane.f32.xlu1 %v5434_v21  ;;  %v5374_v43 = vpop.permute.xlu1 %5373  ;;  %s3137_s11 = sshll.u32 %s5504_s0, 4  ;;  %s3138_s11 = int_to_ptr.vmem [resolvable:$true] %s3137_s11 }
 0x9a3   :  { %v5376_v5 = vunpack.i.h.bf16 %v5374_v43  ;;  %v5375_v48 = vunpack.i.l.bf16 %v5374_v43  ;;  %4885 = vmatpush3.bf16.msra.mxu0 %v4884_v27  ;;  %p5452_p1 = scmp.lt.s32.totalorder %s3138_s11, %s3138_s11 }
 0x9a4   :  { %4886 = vmatprep.subr.bf16.mxu0 %v5495_v46 }
 0x9a5   :  { %v4887_v35 = vpack.c.bf16 %v5376_v5, %v5375_v48 }
 0x9a6   :  { %v5384_v12 = vpop.permute.xlu1 %5383 }
 0x9a7   :  { %v5386_v6 = vunpack.i.h.bf16 %v5384_v12  ;;  %v5385_v25 = vunpack.i.l.bf16 %v5384_v12  ;;  %4888 = vmatpush3.bf16.msra.mxu0 %v4887_v35 }
 0x9a8   :  { %4889 = vmatprep.subr.bf16.mxu0 %v5495_v46 }
 0x9a9   :  { %v4890_v33 = vpack.c.bf16 %v5386_v6, %v5385_v25 }
 0x9aa   :  { %v5394_v28 = vpop.permute.xlu1 %5393 }
 0x9ab   :  { %v5396_v42 = vunpack.i.h.bf16 %v5394_v28  ;;  %v5395_v20 = vunpack.i.l.bf16 %v5394_v28  ;;  %4891 = vmatpush3.bf16.msra.mxu0 %v4890_v33 }
 0x9ac   :  { %4892 = vmatprep.subr.bf16.mxu0 %v5495_v46 }
 0x9ad   :  { %v4893_v29 = vpack.c.bf16 %v5396_v42, %v5395_v20 }
 0x9af   :  { %4894 = vmatpush3.bf16.msra.mxu0 %v4893_v29 }
 0x9b0   :  { %4895 = vmatprep.subr.bf16.mxu0 %v5495_v46 }
 0x9b3   :  { %5403 = vrot.lane.b32.xlu1 %v6132_v47, %s5500_s22 }
 0x9b7   :  { %1865 = vrot.lane.b32.xlu1 %v6405_v52, %s5501_s3  ;;  %s5447_s3 = scalar_lea.vmem %s3138_s11, 256 }
 0x9b8   :  { %p5448_p0 = scmp.ne.s32.totalorder %s3138_s11, %s5447_s3  ;;  %p5453_p2 = scmp.lt.s32.totalorder %s5447_s3, %s5447_s3 }
 0x9ba   :  { %p5454_p3 = por %p5453_p2, %p5452_p1 }
 0x9bb   :  { %2412 = vrot.lane.b32.xlu1 %v6572_v30, %s5502_s26 }
 0x9bc   :  { %p5455_p4 = pnand %p5454_p3, %p5448_p0 }
 0xa0e   :  { %v2706_v38 = vpop.xlane.xlu0 %2705 }
 0xa0f   :  { %5435 = vrcp.f32 %v2706_v38 }
 0xa12   :  { %v5399_v49 = vpop.permute.xlu0 %5398 }
 0xa13   :  { %v5401_v59 = vunpack.i.h.bf16 %v5399_v49  ;;  %v5400_v3 = vunpack.i.l.bf16 %v5399_v49 }
 0xa15   :  { %v4872_v14 = vpack.c.bf16 %v5401_v59, %v5400_v3 }
 0xa16   :  { %v1864_v45 = vpop.permute.xlu0 %1863 }
 0xa17   :  { %1870 = vst.msk [vmem:[#allocation2] sm:$0xff] %vm1869_vm4, %v1864_v45  ;;  %4873 = vmatpush3.bf16.msra.mxu1 %v4872_v14 }
 0xa18   :  { %4899 = vmatprep.subr.bf16.mxu1 %v4898_v34 }
 0xa19   :  { %v5436_v46 = vpop.eup %5435 }
 0xa1a   :  { %v2411_v55 = vpop.permute.xlu0 %2410  ;;  %v2711_v47 = vmul.f32 %v5436_v46, %v6611_v37 }
 0xa1b   :  { %2417 = vst.msk [vmem:[#allocation2] sm:$0xff] %vm2416_vm5, %v2411_v55 }
 0xa1c   :  { %v2715_v52 = vadd.f32 %v2711_v47, %v6504_v9  ;;  %4370 = vmatmul.mubr.f32.vlgmr.msra.gmra.mrb[46].mxu1 %v2711_v47 }
 0xa1d   :  { %4901 = vmatpush3.bf16.msra.mxu1 %v4898_v34 }
 0xa1e   :  { %v2968_v30 = vmul.f32 0.25, %v2715_v52 }
 0xa20   :  { %2970 = vst [vmem:[#allocation5] sm:$0xff] %v2968_v30 }
 0xa2f   :  { %v2708_v2 = vpop.xlane.xlu1 %2707 }
 0xa30   :  { %5437 = vrcp.f32 %v2708_v2 }
 0xa33   :  { %v5404_v15 = vpop.permute.xlu1 %5403 }
 0xa34   :  { %v5406_v50 = vunpack.i.h.bf16 %v5404_v15  ;;  %v5405_v24 = vunpack.i.l.bf16 %v5404_v15 }
 0xa36   :  { %v4896_v58 = vpack.c.bf16 %v5406_v50, %v5405_v24 }
 0xa37   :  { %v1866_v1 = vpop.permute.xlu1 %1865 }
 0xa38   :  { %1871 = vst.msk [vmem:[#allocation2 + $0x8] sm:$0xff] %vm1869_vm4, %v1866_v1  ;;  %4897 = vmatpush3.bf16.msra.mxu0 %v4896_v58 }
 0xa3a   :  { %v5438_v11 = vpop.eup %5437 }
 0xa3b   :  { %v2413_v41 = vpop.permute.xlu1 %2412  ;;  %v2712_v37 = vmul.f32 %v5438_v11, %v5434_v21 }
 0xa3c   :  { %2418 = vst.msk [vmem:[#allocation2 + $0x8] sm:$0xff] %vm2416_vm5, %v2413_v41 }
 0xa3d   :  { %v2716_v9 = vadd.f32 %v2712_v37, %v6523_v44  ;;  %4405 = vmatmul.mubr.f32.vlgmr.msra.gmra.mrb[48].mxu0 %v2712_v37  ;;  %v2977_v44 = vld [vmem:[%s6728_s10 + $0x18] sm:$0xff] }
 0xa3e   :  { %v4902_v18 = vpack.c.bf16 %v2977_v44, %v2976_v60 }
 0xa3f   :  { %v2969_v22 = vmul.f32 0.25, %v2716_v9 }
 0xa40   :  { %4903 = vmatprep.subr.bf16.mxu1 %v4902_v18 }
 0xa41   :  { %2971 = vst [vmem:[#allocation5 + $0x8] sm:$0xff] %v2969_v22  ;;  %4905 = vmatpush3.bf16.msra.mxu1 %v4902_v18 }
 0xa42   :  { %4907 = vmatprep.subr.bf16.mxu1 %v4906_v0 }
 0xa45   :  { %4909 = vmatpush3.bf16.msra.mxu1 %v4906_v0 }
 0xa46   :  { %4911 = vmatprep.subr.bf16.mxu1 %v4910_v7 }
 0xa49   :  { %4913 = vmatpush3.bf16.msra.mxu1 %v4910_v7 }
 0xaef   :  { %v2833_v17 = vpop.f32.mrb[46].mxu1 }
 0xaf0   :  { %2957 = vrot.lane.b32.xlu0 %v2833_v17, %s5503_s7  ;;  %v4371_v61 = vpop.f32.mrb[47].mxu1 }
 0xb10   :  { %v2951_v62 = vpop.f32.mrb[48].mxu0 }
 0xb11   :  { %2959 = vrot.lane.b32.xlu1 %v2951_v62, %s5503_s7  ;;  %v4406_v57 = vpop.f32.mrb[49].mxu0 }
 0xb62   :  { %v2958_v10 = vpop.permute.xlu0 %2957 }
 0xb63   :  { %2964 = vst.msk [vmem:[#allocation2] sm:$0xff] %vm2963_vm6, %v2958_v10 }
 0xb6a   :  { %v2972_v13 = vld [vmem:[#allocation2] sm:$0xff] }
 0xb6b   :  { %4423 = vmatprep.mubr.msk.f32.mxu1 %vm2989_vm7, %v2972_v13 }
 0xb83   :  { %v2960_v26 = vpop.permute.xlu1 %2959 }
 0xb84   :  { %2965 = vst.msk [vmem:[#allocation2 + $0x8] sm:$0xff] %vm2963_vm6, %v2960_v26 }
 0xb8b   :  { %v2973_v19 = vld [vmem:[#allocation2 + $0x8] sm:$0xff] }
 0xb8c   :  { %4424 = vmatmul.mubr.msk.f32.vlgmr.msra.gmra.mrb[48].mxu1 %vm2989_vm7, %v2973_v19 }
 0xc5f   :  { %v4425_v36 = vpop.f32.mrb[48].mxu1 }
 0xc60   :  { %v3068_v63 = vadd.f32 %v4425_v36, %v3359_v40  ;;  %v3062_v23 = vpop.f32.mrb[49].mxu1 }
 0xc61   :  { %v3063_v8 = vadd.f32 %v3359_v40, %v3062_v23 }
 0xc62   :  { %v3072_v53 = vadd.f32 %v5445_v39, %v3068_v63 }
 0xc63   :  { %v3071_v21 = vadd.f32 %v5446_v31, %v3063_v8 }
 0xc64   :  { %v3076_v27 = vsel %vm128_vm0, %v3072_v53, 0.0 }
 0xc65   :  { %3077 = vadd.xlane.f32.xlu1 %v3076_v27  ;;  %v3073_v43 = vsel %vm128_vm0, %v3071_v21, 0.0 }
 0xc66   :  { %3074 = vadd.xlane.f32.xlu0 %v3073_v43 }
 0xcf2   :  { %v3078_v5 = vpop.xlane.xlu1 %3077 }
 0xcf3   :  { %v3081_v48 = vmul.f32 0.03125, %v3078_v5  ;;  %v3075_v35 = vpop.xlane.xlu0 %3074 }
 0xcf4   :  { %v3080_v12 = vmul.f32 0.03125, %v3075_v35 }
 0xcf5   :  { %v3083_v6 = vsub.f32 %v3072_v53, %v3081_v48 }
 0xcf6   :  { %v3082_v25 = vsub.f32 %v3071_v21, %v3080_v12 }
 0xcf7   :  { %v3085_v42 = vmul.f32 %v3083_v6, %v3083_v6 }
 0xcf8   :  { %v3084_v33 = vmul.f32 %v3082_v25, %v3082_v25 }
 0xcf9   :  { %v3089_v20 = vsel %vm128_vm0, %v3085_v42, 0.0 }
 0xcfa   :  { %v3086_v28 = vsel %vm128_vm0, %v3084_v33, 0.0 }
 0xcfb   :  { %3087 = vadd.xlane.f32.xlu0 %v3086_v28 }
 0xcff   :  { %3090 = vadd.xlane.f32.xlu0 %v3089_v20 }
 0xd00   :  { %5458 = shalt.err (!%p5455_p4)
}
 0xd01   :  { %s5459_s28 = scalar_lea.hbm %s6733_s15, 256 }
 0xd02   :  { %p5460_p5 = scmp.ne.s32.totalorder %s6733_s15, %s5459_s28  ;;  %p5463_p6 = scmp.lt.u32.totalorder %s5459_s28, %s6733_s15 }
 0xd04   :  { %p5465_p7 = pnand %p5463_p6, %p5460_p5 }
 0xd06   :  { %5468 = shalt.err (!%p5465_p7)
}
 0xd07   :  { %s5505_s16 = smov 128   ;;  %s5506_s2 = smov 8   ;;  %v3362_v46 = vld [vmem:[%s6730_s12] ss:$0 sm:$0xff] }
 0xd08   :  { %3143 = dma.vmem_to_hbm [thread:$0]  %s3138_s11, 256, %s6733_s15, [#allocation6], %s5505_s16, %s5505_s16, %s5506_s2  }
 0xd09   :  { %v3363_v47 = vld [vmem:[%s6731_s13] ss:$0 sm:$0xff]  ;;  %s5507_s15 = smov [#allocation3]  }
 0xd0a   :  { %s3125_s19 = sshll.u32 %s5507_s15, 4  ;;  %s3126_s19 = int_to_ptr.vmem [resolvable:$true] %s3125_s19 }
 0xd0b   :  { %s5469_s20 = scalar_lea.vmem %s3126_s19, 256  ;;  %p5474_p9 = scmp.lt.s32.totalorder %s3126_s19, %s3126_s19 }
 0xd0c   :  { %p5470_p8 = scmp.ne.s32.totalorder %s3126_s19, %s5469_s20  ;;  %p5475_p10 = scmp.lt.s32.totalorder %s5469_s20, %s5469_s20 }
 0xd0e   :  { %p5476_p11 = por %p5475_p10, %p5474_p9 }
 0xd10   :  { %p5477_p12 = pnand %p5476_p11, %p5470_p8 }
 0xd88   :  { %v3088_v29 = vpop.xlane.xlu0 %3087 }
 0xd89   :  { %v3092_v38 = vmul.f32 0.03125, %v3088_v29 }
 0xd8b   :  { %v3094_v49 = vadd.f32 1e-05, %v3092_v38 }
 0xd8c   :  { %v3091_v59 = vpop.xlane.xlu0 %3090 }
 0xd8d   :  { %5439 = vrsqrt.f32 %v3094_v49  ;;  %v3093_v3 = vmul.f32 0.03125, %v3091_v59 }
 0xd8f   :  { %v3095_v14 = vadd.f32 1e-05, %v3093_v3 }
 0xd91   :  { %5441 = vrsqrt.f32 %v3095_v14 }
 0xd97   :  { %v5440_v45 = vpop.eup %5439 }
 0xd98   :  { %v3098_v55 = vmul.f32 %v5440_v45, %v3082_v25 }
 0xd9a   :  { %v3107_v52 = vmul.f32 %v3362_v46, %v3098_v55 }
 0xd9b   :  { %v5442_v30 = vpop.eup %5441 }
 0xd9c   :  { %v3099_v2 = vmul.f32 %v5442_v30, %v3083_v6  ;;  %v3116_v15 = vadd.f32 %v3363_v47, %v3107_v52 }
 0xd9e   :  { %v3108_v50 = vmul.f32 %v3362_v46, %v3099_v2  ;;  %3118 = vst.msk [vmem:[#allocation3] sm:$0xff] %vm128_vm0, %v3116_v15 }
 0xda0   :  { %v3117_v24 = vadd.f32 %v3363_v47, %v3108_v50 }
 0xda2   :  { %3119 = vst.msk [vmem:[#allocation3 + $0x8] sm:$0xff] %vm128_vm0, %v3117_v24 }
 0xda3   :  { %5480 = shalt.err (!%p5477_p12)
}
 0xda4   :  { %s5481_s21 = scalar_lea.hbm %s6732_s14, 256 }
 0xda5   :  { %p5482_p13 = scmp.ne.s32.totalorder %s6732_s14, %s5481_s21  ;;  %p5485_p0 = scmp.lt.u32.totalorder %s5481_s21, %s6732_s14 }
 0xda7   :  { %p5487_p1 = pnand %p5485_p0, %p5482_p13 }
 0xda9   :  { %5490 = shalt.err (!%p5487_p1)
}
 0xdaa   :  { %3131 = dma.vmem_to_hbm [thread:$0]  %s3126_s19, 256, %s6732_s14, [#allocation4], %s5505_s16, %s5505_s16, %s5506_s2  }
 0xdab   :  { %5491 = dma.done.wait [#allocation4], 256  }
 0xdac   :  { %5492 = vsyncadd [#allocation4], 4294967040 }
 0xdad   :  { %5493 = dma.done.wait [#allocation6], 256  }
 0xdae   :  { %5494 = vsyncadd [#allocation6], 4294967040 }
 0xdaf   :  { %3150 = vsyncpa [#allocation4], 1 }
 0xdb0   :  { %3151 = vsyncpa [#allocation6], 1 }

</bundles_post_ra>
